<compile_context>
chip_gen: v7x
topology: tpu7x:2x2x1
jax: 0.10.0
libtpu: 0.0.40
codegen_flags: <defaults>
</compile_context>

<pallas_src>
import functools

import jax
import jax.numpy as jnp
from jax.experimental import pallas as pl
from jax.experimental.pallas import tpu as pltpu


# --------------------------- tiled matmul kernels ---------------------------

def _matmul_kernel(x_ref, w_ref, o_ref, acc_ref):
    @pl.when(pl.program_id(2) == 0)
    def _init():
        acc_ref[...] = jnp.zeros_like(acc_ref)

    acc_ref[...] += jnp.dot(x_ref[...], w_ref[...],
                            preferred_element_type=jnp.float32)

    @pl.when(pl.program_id(2) == pl.num_programs(2) - 1)
    def _store():
        o_ref[...] = acc_ref[...].astype(o_ref.dtype)


def _matmul_bias_kernel(x_ref, w_ref, b_ref, o_ref, acc_ref):
    @pl.when(pl.program_id(2) == 0)
    def _init():
        acc_ref[...] = jnp.zeros_like(acc_ref)

    acc_ref[...] += jnp.dot(x_ref[...], w_ref[...],
                            preferred_element_type=jnp.float32)

    @pl.when(pl.program_id(2) == pl.num_programs(2) - 1)
    def _store():
        # bias added once per output tile, in f32, before the final cast
        o_ref[...] = (acc_ref[...] + b_ref[...].astype(jnp.float32)
                      ).astype(o_ref.dtype)


def _fit_tile(dim, target, quantum):
    """Largest tile <= target that divides `dim` and is a multiple of `quantum`."""
    assert dim % quantum == 0, (dim, quantum)
    t = max(quantum, min(target, dim))
    t = (t // quantum) * quantum
    while dim % t:
        t -= quantum
    return t


def pallas_linear(x, w, b=None, *, tm=512, tn=512, tk=1024):
    """x: [M, K] (bf16), w: [K, N] (bf16), b: optional [N] (f32).

    Larger tiles than before: fewer weight re-streams from HBM and fewer grid steps.
    Working set at (512, 512, 1024) is ~6 MiB -> safe on 64 MiB-VMEM v7x as well.
    """
    M, K = x.shape
    N = w.shape[1]
    # TODO(synk): pad ragged edges instead of requiring quantum divisibility.
    tm = _fit_tile(M, tm, 8)
    tn = _fit_tile(N, tn, 128)
    tk = _fit_tile(K, tk, 128)
    grid = (M // tm, N // tn, K // tk)

    cparams = pltpu.CompilerParams(
        dimension_semantics=("parallel", "parallel", "arbitrary"),
        vmem_limit_bytes=64 * 1024 * 1024)

    x_spec = pl.BlockSpec((tm, tk), lambda i, j, k: (i, k))
    w_spec = pl.BlockSpec((tk, tn), lambda i, j, k: (k, j))
    o_spec = pl.BlockSpec((tm, tn), lambda i, j, k: (i, j))
    scratch = [pltpu.VMEM((tm, tn), jnp.float32)]

    if b is not None:
        b_spec = pl.BlockSpec((1, tn), lambda i, j, k: (0, j))
        return pl.pallas_call(
            _matmul_bias_kernel,
            out_shape=jax.ShapeDtypeStruct((M, N), x.dtype),
            grid_spec=pltpu.PrefetchScalarGridSpec(
                num_scalar_prefetch=0, grid=grid,
                in_specs=[x_spec, w_spec, b_spec],
                out_specs=o_spec, scratch_shapes=scratch),
            compiler_params=cparams,
        )(x, w, b.reshape(1, N).astype(jnp.float32))

    return pl.pallas_call(
        _matmul_kernel,
        out_shape=jax.ShapeDtypeStruct((M, N), x.dtype),
        grid_spec=pltpu.PrefetchScalarGridSpec(
            num_scalar_prefetch=0, grid=grid,
            in_specs=[x_spec, w_spec],
            out_specs=o_spec, scratch_shapes=scratch),
        compiler_params=cparams,
    )(x, w)


# --------------------- one-pass neox RoPE over the Q/K columns ---------------------

def _rope_kernel(qk_ref, cos_ref, sin_ref, o_ref, *,
                 num_q_heads, num_rot_heads, head_dim, scale):
    half = head_dim // 2
    cos = cos_ref[...]                         # [block, head_dim] f32
    sin = sin_ref[...]
    for h in range(num_rot_heads):             # static loop over q + k heads
        sl = slice(h * head_dim, (h + 1) * head_dim)
        x = qk_ref[:, sl].astype(jnp.float32)
        # neox rotation:  out = x * cos2 + roll(x, half) * sin2   (sign baked into sin2)
        rot = x * cos + pltpu.roll(x, shift=half, axis=1) * sin
        if h < num_q_heads:                    # fold softmax scale into Q only
            rot = rot * scale
        o_ref[:, sl] = rot.astype(o_ref.dtype)


def pallas_rope_qk(qkv, cos2, sin2, *, num_heads, num_kv_heads, head_dim, scale,
                   block=256):
    """Rotate (and, for Q, scale) the Q/K columns of the fused QKV activation once.

    Reads only the first (num_heads + num_kv_heads) * head_dim columns of qkv; V is
    untouched.  Returns qk_rot: [S, (num_heads + num_kv_heads) * head_dim].
    The rotary tables are read once per sequence tile here, so they never appear in the
    attention kernel's KV inner loop.
    """
    S = qkv.shape[0]
    block = min(block, S)
    # TODO(synk): pad / mask ragged sequence tails instead of requiring divisibility.
    assert S % block == 0
    num_rot = num_heads + num_kv_heads
    rot_width = num_rot * head_dim

    kernel = functools.partial(_rope_kernel, num_q_heads=num_heads,
                               num_rot_heads=num_rot, head_dim=head_dim, scale=scale)
    return pl.pallas_call(
        kernel,
        out_shape=jax.ShapeDtypeStruct((S, rot_width), qkv.dtype),
        grid_spec=pltpu.PrefetchScalarGridSpec(
            num_scalar_prefetch=0, grid=(S // block,),
            in_specs=[
                # wide block over all Q+K heads at once (first rot_width columns of qkv)
                pl.BlockSpec((block, rot_width), lambda i: (i, 0)),
                pl.BlockSpec((block, head_dim), lambda i: (i, 0)),
                pl.BlockSpec((block, head_dim), lambda i: (i, 0)),
            ],
            out_specs=pl.BlockSpec((block, rot_width), lambda i: (i, 0))),
        compiler_params=pltpu.CompilerParams(
            dimension_semantics=("parallel",),
            vmem_limit_bytes=32 * 1024 * 1024),
    )(qkv, cos2, sin2)


# --------------------- flash attention (causal, GQA, pre-rotated Q/K) ---------------------

def _flash_attn_kernel(qi_ref, ki_ref,                 # scalar-prefetched schedule (SMEM)
                       q_ref, k_ref, v_ref, o_ref,
                       m_ref, l_ref, acc_ref,
                       *, group, head_dim, block_q, block_k):
    t = pl.program_id(1)
    qi = qi_ref[t]
    ki = ki_ref[t]
    q_start = qi * block_q
    k_start = ki * block_k

    @pl.when(ki == 0)
    def _init():
        m_ref[...] = jnp.full_like(m_ref, -jnp.inf)
        l_ref[...] = jnp.zeros_like(l_ref)
        acc_ref[...] = jnp.zeros_like(acc_ref)

    # K/V tile loaded once per step and reused by all `group` query heads of this kv head.
    k_tile = k_ref[...]
    v_tile = v_ref[...]

    def update(masked):
        if masked:
            row = q_start + jax.lax.broadcasted_iota(jnp.int32, (block_q, block_k), 0)
            col = k_start + jax.lax.broadcasted_iota(jnp.int32, (block_q, block_k), 1)
            keep = col <= row
        for g in range(group):                 # static loop over the GQA head group
            hs = slice(g * head_dim, (g + 1) * head_dim)
            # Q is already rotated and scaled; contract on head_dim (no materialized K^T).
            s = jax.lax.dot_general(q_ref[:, hs], k_tile, (((1,), (1,)), ((), ())),
                                    preferred_element_type=jnp.float32)
            if masked:
                s = jnp.where(keep, s, jnp.float32(-1e30))
            m_prev = m_ref[g]
            m_new = jnp.maximum(m_prev, jnp.max(s, axis=-1, keepdims=True))
            alpha = jnp.exp(m_prev - m_new)
            p = jnp.exp(s - m_new)
            l_ref[g] = alpha * l_ref[g] + jnp.sum(p, axis=-1, keepdims=True)
            acc_ref[:, hs] = alpha * acc_ref[:, hs] + jax.lax.dot_general(
                p.astype(v_tile.dtype), v_tile, (((1,), (0,)), ((), ())),
                preferred_element_type=jnp.float32)
            m_ref[g] = m_new

    # The schedule only contains tiles at or below the diagonal, so every step is either
    # fully unmasked (strictly below) or diagonal (needs the causal mask).
    is_full = (k_start + block_k) <= q_start

    @pl.when(is_full)
    def _full_tile():
        update(False)

    @pl.when(jnp.logical_not(is_full))
    def _diag_tile():
        update(True)

    # Last scheduled KV tile for this q tile -> normalize and emit the output block.
    @pl.when((ki + 1) * block_k >= (qi + 1) * block_q)
    def _finalize():
        inv_l = pl.reciprocal(l_ref[...], approx=True)   # EUP slot, essentially free
        for g in range(group):
            hs = slice(g * head_dim, (g + 1) * head_dim)
            o_ref[:, hs] = (acc_ref[:, hs] * inv_l[g]).astype(o_ref.dtype)


def pallas_causal_gqa_attention(qk_rot, qkv, *, num_heads, num_kv_heads, head_dim,
                                block_q=256, block_k=128):
    """qk_rot: [S, (num_heads + num_kv_heads) * head_dim] rotated (+scaled) Q and K.
    qkv:    [S, (num_heads + 2*num_kv_heads) * head_dim] fused QKV output (V read from here).
    Returns the attention context: [S, num_heads * head_dim].

    grid = (num_kv_heads, T) where T enumerates only the lower-triangular (q-tile, kv-tile)
    pairs via scalar-prefetched schedule arrays -> no above-diagonal DMAs or grid steps.
    One K/V tile serves the whole GQA head group (Q/output blocks are group*head_dim wide).
    """
    S = qk_rot.shape[0]
    block_q, block_k = min(block_q, S), min(block_k, S)
    # TODO(synk): pad / mask ragged sequence tails instead of requiring divisibility.
    assert S % block_q == 0 and S % block_k == 0
    assert num_heads % num_kv_heads == 0
    group = num_heads // num_kv_heads
    k_off = num_heads                    # k head-blocks start after the q heads in qk_rot
    v_off = num_heads + num_kv_heads     # v head-blocks start after q+k heads in qkv

    # Flattened lower-triangular schedule (q-tile index, kv-tile index) per grid step.
    q_tiles = S // block_q
    qi_list, ki_list = [], []
    for qi in range(q_tiles):
        for ki in range(((qi + 1) * block_q - 1) // block_k + 1):
            qi_list.append(qi)
            ki_list.append(ki)
    qi_sched = jnp.asarray(qi_list, dtype=jnp.int32)
    ki_sched = jnp.asarray(ki_list, dtype=jnp.int32)

    # NOTE: on v7x (2 TCs) the leading "parallel" axis has extent num_kv_heads; for very
    # small kv-head counts a coarser q-super-block parallel axis could balance better.
    grid = (num_kv_heads, len(qi_list))
    kernel = functools.partial(_flash_attn_kernel, group=group, head_dim=head_dim,
                               block_q=block_q, block_k=block_k)

    # TODO(synk): on bandwidth-limited v5e, pipeline_mode=pl.Buffered(3) on the K/V specs
    # is a cheap follow-up if K/V DMA shows up exposed in the profile.
    return pl.pallas_call(
        kernel,
        out_shape=jax.ShapeDtypeStruct((S, num_heads * head_dim), qk_rot.dtype),
        grid_spec=pltpu.PrefetchScalarGridSpec(
            num_scalar_prefetch=2, grid=grid,
            in_specs=[
                # Q: all `group` query heads of this kv head (contiguous columns in qk_rot)
                pl.BlockSpec((block_q, group * head_dim),
                             lambda h, t, qi_s, ki_s: (qi_s[t], h)),
                # K (rotated) for this kv head
                pl.BlockSpec((block_k, head_dim),
                             lambda h, t, qi_s, ki_s: (ki_s[t], k_off + h)),
                # V straight from the fused QKV activation
                pl.BlockSpec((block_k, head_dim),
                             lambda h, t, qi_s, ki_s: (ki_s[t], v_off + h)),
            ],
            out_specs=pl.BlockSpec((block_q, group * head_dim),
                                   lambda h, t, qi_s, ki_s: (qi_s[t], h)),
            scratch_shapes=[
                pltpu.VMEM((group, block_q, 1), jnp.float32),          # running max m
                pltpu.VMEM((group, block_q, 1), jnp.float32),          # running denom l
                pltpu.VMEM((block_q, group * head_dim), jnp.float32),  # output accumulator
            ]),
        compiler_params=pltpu.CompilerParams(
            dimension_semantics=("parallel", "arbitrary"),
            vmem_limit_bytes=32 * 1024 * 1024),
    )(qi_sched, ki_sched, qk_rot, qk_rot, qkv)


# ----------------------------- glue / module -----------------------------

def neox_rope_tables(positions, head_dim, base):
    """cos2/sin2 tables so the in-kernel rotation is: x*cos2 + roll(x, half)*sin2."""
    half = head_dim // 2
    inv_freq = 1.0 / (base ** (jnp.arange(half, dtype=jnp.float32) / half))
    freqs = positions.astype(jnp.float32)[:, None] * inv_freq[None, :]   # [S, half]
    cos, sin = jnp.cos(freqs), jnp.sin(freqs)
    cos2 = jnp.concatenate([cos, cos], axis=-1)       # [S, D]
    sin2 = jnp.concatenate([-sin, sin], axis=-1)      # [S, D]  (sign of neox folded in)
    return cos2, sin2


class BailingAttentionPallas:
    """Forward-pass equivalent of vLLM's BailingAttention (tp_size=1, prefill path)."""

    def __init__(self, hidden_size, num_heads, num_kv_heads, head_dim,
                 rope_theta=10000.0, use_qkv_bias=True,
                 param_dtype=jnp.bfloat16, key=None):
        self.hidden_size = hidden_size
        self.num_heads = num_heads
        self.num_kv_heads = num_kv_heads
        self.head_dim = head_dim
        self.q_size = num_heads * head_dim
        self.kv_size = num_kv_heads * head_dim
        self.scale = head_dim ** -0.5
        self.rope_theta = rope_theta

        k0, k1, k2 = jax.random.split(key, 3)
        qkv_out = self.q_size + 2 * self.kv_size
        # deterministic synthetic weights: bf16 operands for the MXU, bias kept in f32
        self.w_qkv = (jax.random.normal(k0, (hidden_size, qkv_out), jnp.float32)
                      * 0.02).astype(param_dtype)
        self.b_qkv = (jax.random.normal(k1, (qkv_out,), jnp.float32) * 0.02
                      if use_qkv_bias else None)
        self.w_dense = (jax.random.normal(k2, (self.q_size, hidden_size),
                                          jnp.float32) * 0.02).astype(param_dtype)
        # RowParallelLinear with bias=False -> no dense bias

    def __call__(self, hidden_states, position_ids):
        # 1) fused QKV projection (tiled matmul + fused bias)
        qkv = pallas_linear(hidden_states, self.w_qkv, self.b_qkv)
        # 2) neox RoPE applied ONCE to the Q/K columns (Q also pre-scaled by 1/sqrt(d));
        #    rotary tables never enter the attention inner loop.
        cos2, sin2 = neox_rope_tables(position_ids, self.head_dim, self.rope_theta)
        qk_rot = pallas_rope_qk(qkv, cos2, sin2, num_heads=self.num_heads,
                                num_kv_heads=self.num_kv_heads,
                                head_dim=self.head_dim, scale=self.scale)
        # 3) causal GQA flash attention over the lower-triangular schedule, K/V shared
        #    across each GQA head group, V read straight from the fused QKV activation.
        ctx = pallas_causal_gqa_attention(
            qk_rot, qkv, num_heads=self.num_heads,
            num_kv_heads=self.num_kv_heads, head_dim=self.head_dim)
        # 4) output projection
        return pallas_linear(ctx, self.w_dense, None)


if __name__ == "__main__":
    key = jax.random.PRNGKey(0)
    k_in, k_params = jax.random.split(key)

    # small but TPU-tile-friendly config: hidden=512, 4 heads, 2 kv heads,
    # head_dim=128, seq=256
    seq, hidden = 256, 512
    num_heads, num_kv_heads, head_dim = 4, 2, 128

    attn = BailingAttentionPallas(hidden_size=hidden, num_heads=num_heads,
                                  num_kv_heads=num_kv_heads, head_dim=head_dim,
                                  rope_theta=10000.0, use_qkv_bias=True,
                                  key=k_params)

    hidden_states = jax.random.normal(
        k_in, (seq, hidden), jnp.float32).astype(jnp.bfloat16)
    position_ids = jnp.arange(seq, dtype=jnp.int32)

    out = attn(hidden_states, position_ids)
    jax.block_until_ready(out)
    assert out.shape == (seq, hidden)
    assert bool(jnp.all(jnp.isfinite(out.astype(jnp.float32))))
    print("KERNEL_OK")
</pallas_src>

<mosaic_0001>
module attributes {stable_mosaic.version = 11 : i64} {
  func.func @_matmul_bias_kernel(%arg0: i32, %arg1: i32, %arg2: i32, %arg3: memref<256x512xbf16, #tpu.memory_space<vmem>>, %arg4: memref<512x512xbf16, #tpu.memory_space<vmem>>, %arg5: memref<1x512xf32, #tpu.memory_space<vmem>>, %arg6: memref<256x512xbf16, #tpu.memory_space<vmem>>, %arg7: memref<256x512xf32, #tpu.memory_space<vmem>>) attributes {dimension_semantics = [#tpu.dimension_semantics<parallel>, #tpu.dimension_semantics<parallel>, #tpu.dimension_semantics<arbitrary>], iteration_bounds = array<i64: 1, 2, 1>, scalar_prefetch = 0 : i64, scratch_operands = 1 : i64, tpu.core_type = #tpu.core_type<tc>, window_params = [{transform_indices = @transform_0, window_bounds = array<i64: 256, 512>}, {transform_indices = @transform_1, window_bounds = array<i64: 512, 512>}, {transform_indices = @transform_2, window_bounds = array<i64: 1, 512>}, {transform_indices = @transform_3, window_bounds = array<i64: 256, 512>}]} {
    %c0_i32 = arith.constant 0 : i32
    %0 = arith.cmpi eq, %arg2, %c0_i32 : i32
    %1 = arith.extui %0 : i1 to i32
    %c0_i32_0 = arith.constant 0 : i32
    %2 = arith.cmpi ne, %1, %c0_i32_0 : i32
    scf.if %2 {
      %cst_10 = arith.constant 0.000000e+00 : f32
      %12 = vector.broadcast %cst_10 : f32 to vector<256x512xf32>
      %c0_11 = arith.constant 0 : index
      %c0_12 = arith.constant 0 : index
      %13 = vector.load %arg7[%c0_11, %c0_12] : memref<256x512xf32, #tpu.memory_space<vmem>>, vector<256x512xf32>
      tpu.vector_store %arg7[%c0_11, %c0_12], %12 {strides = array<i32>} : memref<256x512xf32, #tpu.memory_space<vmem>>, vector<256x512xf32>,
    } else {
    }
    %c0 = arith.constant 0 : index
    %c0_1 = arith.constant 0 : index
    %3 = vector.load %arg7[%c0, %c0_1] : memref<256x512xf32, #tpu.memory_space<vmem>>, vector<256x512xf32>
    %c0_2 = arith.constant 0 : index
    %c0_3 = arith.constant 0 : index
    %4 = vector.load %arg3[%c0_2, %c0_3] : memref<256x512xbf16, #tpu.memory_space<vmem>>, vector<256x512xbf16>
    %c0_4 = arith.constant 0 : index
    %c0_5 = arith.constant 0 : index
    %5 = vector.load %arg4[%c0_4, %c0_5] : memref<512x512xbf16, #tpu.memory_space<vmem>>, vector<512x512xbf16>
    %cst = arith.constant dense<0.000000e+00> : vector<256x512xf32>
    %6 = tpu.matmul %4, %5, %cst {dimension_numbers = #tpu.dot_dimension_numbers<[1], [0], [0], [1], [0, 0, 1, 1], [], []>} : vector<256x512xbf16>, vector<512x512xbf16>, vector<256x512xf32> -> vector<256x512xf32>
    %7 = arith.addf %3, %6 : vector<256x512xf32>
    %c0_6 = arith.constant 0 : index
    %c0_7 = arith.constant 0 : index
    %8 = vector.load %arg7[%c0_6, %c0_7] : memref<256x512xf32, #tpu.memory_space<vmem>>, vector<256x512xf32>
    tpu.vector_store %arg7[%c0_6, %c0_7], %7 {strides = array<i32>} : memref<256x512xf32, #tpu.memory_space<vmem>>, vector<256x512xf32>,
    %c0_i32_8 = arith.constant 0 : i32
    %9 = arith.cmpi eq, %arg2, %c0_i32_8 : i32
    %10 = arith.extui %9 : i1 to i32
    %c0_i32_9 = arith.constant 0 : i32
    %11 = arith.cmpi ne, %10, %c0_i32_9 : i32
    scf.if %11 {
      %c0_10 = arith.constant 0 : index
      %c0_11 = arith.constant 0 : index
      %12 = vector.load %arg7[%c0_10, %c0_11] : memref<256x512xf32, #tpu.memory_space<vmem>>, vector<256x512xf32>
      %c0_12 = arith.constant 0 : index
      %c0_13 = arith.constant 0 : index
      %13 = vector.load %arg5[%c0_12, %c0_13] : memref<1x512xf32, #tpu.memory_space<vmem>>, vector<1x512xf32>
      %14 = vector.broadcast %13 : vector<1x512xf32> to vector<256x512xf32>
      %15 = arith.addf %12, %14 : vector<256x512xf32>
      %16 = arith.truncf %15 : vector<256x512xf32> to vector<256x512xbf16>
      %c0_14 = arith.constant 0 : index
      %c0_15 = arith.constant 0 : index
      %17 = vector.load %arg6[%c0_14, %c0_15] : memref<256x512xbf16, #tpu.memory_space<vmem>>, vector<256x512xbf16>
      tpu.vector_store %arg6[%c0_14, %c0_15], %16 {strides = array<i32>} : memref<256x512xbf16, #tpu.memory_space<vmem>>, vector<256x512xbf16>,
    } else {
    }
    return
  }
  func.func @transform_0(%arg0: i32, %arg1: i32, %arg2: i32) -> (i32, i32) {
    %c0_i32 = arith.constant 0 : i32
    return %arg0, %arg2 : i32, i32
  }
  func.func @transform_1(%arg0: i32, %arg1: i32, %arg2: i32) -> (i32, i32) {
    %c0_i32 = arith.constant 0 : i32
    return %arg2, %arg1 : i32, i32
  }
  func.func @transform_2(%arg0: i32, %arg1: i32, %arg2: i32) -> (i32, i32) {
    %c0_i32 = arith.constant 0 : i32
    %c0_i32_0 = arith.constant 0 : i32
    return %c0_i32, %arg1 : i32, i32
  }
  func.func @transform_3(%arg0: i32, %arg1: i32, %arg2: i32) -> (i32, i32) {
    %c0_i32 = arith.constant 0 : i32
    return %arg0, %arg1 : i32, i32
  }
}

</mosaic_0001>

<bundles_post_ra>
// kernel: tpu_custom_call.1
= control target key start
LH: loop header
LB: loop body
LE: loop exit
PB: predicated region body
PF: predicated region fallthrough
CT: control target
= control target key end

     0   :  { %s5245_s0 = inlined_call_operand.hbm [shape: bf16[256,512], index: 0, kind: input, shape index: {}]   ;;  %s5246_s1 = inlined_call_operand.hbm [shape: bf16[512,1024], index: 1, kind: input, shape index: {}]   ;;  %s5247_s2 = inlined_call_operand.hbm [shape: f32[1,1024], index: 2, kind: input, shape index: {}]   ;;  %s5248_s3 = inlined_call_operand.hbm [shape: bf16[256,1024], index: 3, kind: output, shape index: {}]  }
   0x1   :  { %5256 = sst [smem:[#allocation13_spill]] %s5246_s1 }
   0x2   :  { %8 = vsyncpa [#allocation4], 0 }
   0x3   :  { %9 = vsyncpa [#allocation7], 0 }
   0x4   :  { %11 = vsyncpa [#allocation7 + $0x1], 0 }
   0x5   :  { %12 = vsyncpa [#allocation5], 0 }
   0x6   :  { %14 = vsyncpa [#allocation5 + $0x1], 0  ;;  %s4648_s12 = smov 0   ;;  %s4650_s13 = smov 0  }
   0x7   :  { %s4652_s14 = smov 0   ;;  %s4654_s15 = smov 0  }
   0x8   :  { %s4656_s16 = smov 0   ;;  %s4658_s17 = smov 0  }
   0x9 LB: > { %s35_s18 = sadd.s32 1, %s4612_s16  ;;  %s76_s19 = sadd.s32 1, %s4604_s14  ;;  %s4616_s17 = sphi %s4658_s17, %s20_s17   ;;  %s4612_s16 = sphi %s4656_s16, %s5279_s16   ;;  %s4608_s15 = sphi %s4654_s15, %s5278_s15   ;;  %s4604_s14 = sphi %s4652_s14, %s5277_s14   ;;  %s4600_s13 = sphi %s4650_s13, %s5276_s13   ;;  %s4596_s12 = sphi %s4648_s12, %s5275_s12  }
   0xa   : > { %p37_p0 = scmp.ge.s32.totalorder %s35_s18, 2  ;;  %p83_p1 = scmp.ne.s32.totalorder %s4604_s14, %s4600_s13 }
   0xb   : > { %p84_p2 = scmp.eq.s32.totalorder %s4616_s17, 0  ;;  %p4096_p6 = scmp.lt.s32.totalorder %s4616_s17, 2 }
   0xc   : > { %s5281_s18 = smov (%p37_p0, %s35_s18), 0  ;;  %s186_s22 = sand.u32 1, %s4616_s17  }
   0xd   : > { %p4688_p3 = por %p84_p2, %p83_p1  ;;  %s72_s21 = ssub.s32 %s4612_s16, %s5281_s18 }
   0xe   : > { %p74_p5 = scmp.eq.s32.totalorder %s72_s21, 0  ;;  %s188_s23 = sand.u32 1, %s4604_s14  }
   0xf   : > { %s3603_s25 = sshll.u32 %s188_s23, 10  ;;  %s3875_s26 = sshll.u32 %s4612_s16, 8 }
  0x10   : > { %s4699_s24 = scalar_select %p74_p5, %s4604_s14, %s76_s19  }
  0x11   : > { %s5258_s1 = sld [smem:[#allocation13_spill]]  ;;  %s190_s30 = scalar_lea.vmem [#allocation6], %s3603_s25 }
  0x12   : > { %s200_s4 = sshll.u32 %s190_s30, 4  ;;  %p4713_p7 = pnand %p4096_p6, %p4688_p3  ;;  %s4709_s4 = int_to_ptr.vmem [resolvable:$true] %s200_s4 }
  0x13   : > { %s4717_s6 = scalar_lea.sflag [#allocation7], %s186_s22 }
  0x14   : > { %p4444_p9 = pneg %p4713_p7 }
  0x17   : > { %s4707_s29 = scalar_lea.hbm %s5258_s1, %s3875_s26  ;;  %s4447_s10 = scalar_lea.hbm %s5258_s1, 32768 }
  0x18   : > { %s4442_s7 = scalar_lea.hbm %s4707_s29, 16384  ;;  %p4448_p12 = scmp.lt.u32.totalorder %s4707_s29, %s5258_s1 }
  0x19   : > { %p4443_p8 = scmp.ne.s32.totalorder %s4707_s29, %s4442_s7  ;;  %p4449_p13 = scmp.lt.u32.totalorder %s4447_s10, %s4442_s7 }
  0x1a   : > { %p4451_p2 = scmp.lt.u32.totalorder %s4442_s7, %s4707_s29 }
  0x1b   : > { %p4445_p10 = pnand %p4444_p9, %p4443_p8  ;;  %p4450_p0 = por %p4449_p13, %p4448_p12 }
  0x1d   : > { %p4446_p11 = pneg %p4445_p10  ;;  %p4452_p3 = por %p4451_p2, %p4450_p0 }
  0x1f   : > { %p4453_p5 = pnand %p4452_p3, %p4446_p11 }
  0x21   : > { %4456 = shalt.err (!%p4453_p5)
}
  0x22   : > { %s4457_s20 = scalar_lea.vmem %s4709_s4, 16384  ;;  %s4618_s21 = smov [#allocation6]  }
  0x23   : > { %p4458_p6 = scmp.ne.s32.totalorder %s4709_s4, %s4457_s20  ;;  %s4462_s22 = sshll.u32 %s4618_s21, 4  ;;  %s4463_s22 = int_to_ptr.vmem [resolvable:$false] %s4462_s22 }
  0x24   : > { %s4464_s25 = scalar_lea.vmem %s4463_s22, 32768  ;;  %p4465_p4 = scmp.lt.s32.totalorder %s4709_s4, %s4463_s22 }
  0x25   : > { %p4460_p8 = pnand %p4458_p6, %p4444_p9  ;;  %p4466_p12 = scmp.lt.s32.totalorder %s4464_s25, %s4457_s20 }
  0x27   : > { %p4461_p10 = pneg %p4460_p8  ;;  %p4467_p13 = por %p4466_p12, %p4465_p4 }
  0x29   : > { %p4468_p0 = pnand %p4467_p13, %p4461_p10 }
  0x2b   : > { %4471 = shalt.err (!%p4468_p0)
}
  0x2c   : > { %s4619_s26 = smov 512   ;;  %s5249_s27 = smov 256  }
  0x2d   : > { %s5250_s28 = smov 16   ;;  %s4748_s30 = sadd.s32 4294967295, %s4616_s17  }
  0x2e   : > { %4087 = dma.hbm_to_vmem [thread:$0]  (!%p4713_p7), %s4707_s29, 16384, %s4709_s4, %s4717_s6, %s4619_s26, %s5249_s27, %s5250_s28  }
  0x2f   : > { %s3599_s7 = sadd.s32 4294967294, %s4616_s17   ;;  %p89_p4 = scmp.ne.s32.totalorder %s4600_s13, %s4596_s12 }
  0x30   : > { %p5251_p11 = scmp.eq.s32.totalorder %s4748_s30, 0  ;;  %p141_p2 = scmp.eq.s32.totalorder %s4748_s30, 1 }
  0x31   : > { %p147_p3 = scmp.eq.s32.totalorder %s3599_s7, 1  ;;  %p3600_p6 = scmp.ge.s32.totalorder %s4616_s17, 1 }
  0x32   : > { %p4757_p5 = por %p5251_p11, %p89_p4  ;;  %p4765_p8 = por %p141_p2, %p83_p1 }
  0x33   : > { %p4769_p10 = por %p147_p3, %p89_p4  ;;  %p154_p12 = scmp.lt.s32.totalorder %s4616_s17, 3 }
  0x34   : > { %s5260_s8 = scalar_select %p4757_p5, 1, 0 }
  0x35   : > { %s5261_s29 = scalar_select %p4765_p8, 1, 0 }
  0x36   : > { %s5262_s4 = scalar_select %p4769_p10, 1, 0 }
  0x37   : > { %s3606_s9 = sshll.u32 %s188_s23, 2  ;;  %p4776_p13 = pnand %p3600_p6, %p154_p12 }
  0x38   : > { %s4622_s11 = smov [#allocation3]   ;;  %s3876_s20 = sshll.u32 %s4612_s16, 6 }
  0x39   : > { %s5263_s10 = scalar_select %p4776_p13, 1, 0 }
  0x3a   : > { %s172_s19 = sshll.u32 %s4622_s11, 4  ;;  %p4080_p1 = pneg %p4776_p13  ;;  %s4780_s19 = int_to_ptr.vmem [resolvable:$true] %s172_s19 }
  0x3b   : > { %s4788_s25 = scalar_lea.hbm %s5247_s2, %s3876_s20  ;;  %s214_s23 = scalar_lea.vmem [#allocation8], %s3606_s9 }
  0x3c   : > { %s222_s26 = sshll.u32 %s214_s23, 4  ;;  %p4792_p0 = pnand %p4080_p1, %p5251_p11  ;;  %s223_s26 = int_to_ptr.vmem [resolvable:$true] %s222_s26 }
  0x3d   : > { %s4472_s11 = scalar_lea.hbm %s4788_s25, 64  ;;  %s4477_s22 = scalar_lea.hbm %s5247_s2, 128 }
  0x3e   : > { %s5264_s7 = scalar_select %p4792_p0, 1, 0 }
  0x3f   : > { %p4473_p4 = scmp.ne.s32.totalorder %s4788_s25, %s4472_s11  ;;  %p4478_p6 = scmp.lt.u32.totalorder %s4788_s25, %s5247_s2 }
  0x40   : > { %p4479_p12 = scmp.lt.u32.totalorder %s4477_s22, %s4472_s11  ;;  %p4481_p11 = scmp.lt.u32.totalorder %s4472_s11, %s4788_s25 }
  0x41   : > { %p4475_p2 = pnand %p4473_p4, %p4444_p9 }
  0x42   : > { %p4480_p1 = por %p4479_p12, %p4478_p6 }
  0x43   : > { %p4476_p3 = pneg %p4475_p2 }
  0x44   : > { %p4482_p10 = por %p4481_p11, %p4480_p1 }
  0x46   : > { %p4483_p8 = pnand %p4482_p10, %p4476_p3 }
  0x48   : > { %4486 = shalt.err (!%p4483_p8)
}
  0x49   : > { %s4487_s9 = scalar_lea.vmem %s223_s26, 64  ;;  %s4623_s23 = smov [#allocation8]  }
  0x4a   : > { %p4488_p5 = scmp.ne.s32.totalorder %s223_s26, %s4487_s9  ;;  %s4492_s20 = sshll.u32 %s4623_s23, 4  ;;  %s4493_s20 = int_to_ptr.vmem [resolvable:$false] %s4492_s20 }
  0x4b   : > { %s4494_s21 = scalar_lea.vmem %s4493_s20, 128  ;;  %p4495_p13 = scmp.lt.s32.totalorder %s223_s26, %s4493_s20 }
  0x4c   : > { %p4490_p4 = pnand %p4488_p5, %p4444_p9  ;;  %p4496_p0 = scmp.lt.s32.totalorder %s4494_s21, %s4487_s9 }
  0x4e   : > { %p4491_p2 = pneg %p4490_p4  ;;  %p4497_p6 = por %p4496_p0, %p4495_p13 }
  0x50   : > { %p4498_p12 = pnand %p4497_p6, %p4491_p2 }
  0x52   : > { %4501 = shalt.err (!%p4498_p12)
}
  0x53   : > { %4090 = dma.hbm_to_vmem [thread:$0]  (!%p4713_p7), %s4788_s25, 64, %s223_s26, %s4717_s6  }
  0x54   : > { %s4502_s11 = scalar_lea.hbm %s5245_s0, 8192  ;;  %p5265_p11 = scmp.ne.s32.totalorder %s5264_s7, 0 }
  0x55   : > { %p4503_p9 = scmp.ne.s32.totalorder %s5245_s0, %s4502_s11  ;;  %p4509_p13 = scmp.lt.u32.totalorder %s4502_s11, %s5245_s0 }
  0x56   : > { %p4504_p5 = pneg %p5265_p11 }
  0x58   : > { %p4505_p8 = pnand %p4504_p5, %p4503_p9 }
  0x5a   : > { %p4506_p10 = pneg %p4505_p8 }
  0x5c   : > { %p4511_p0 = pnand %p4509_p13, %p4506_p10 }
  0x5e   : > { %4514 = shalt.err (!%p4511_p0)
}
  0x5f   : > { %s4515_s5 = scalar_lea.vmem %s4780_s19, 8192  ;;  %p4523_p4 = scmp.lt.s32.totalorder %s4780_s19, %s4780_s19 }
  0x60   : > { %p4516_p7 = scmp.ne.s32.totalorder %s4780_s19, %s4515_s5  ;;  %p4524_p2 = scmp.lt.s32.totalorder %s4515_s5, %s4515_s5 }
  0x62   : > { %p4518_p3 = pnand %p4516_p7, %p4504_p5  ;;  %p4525_p6 = por %p4524_p2, %p4523_p4 }
  0x64   : > { %p4519_p1 = pneg %p4518_p3 }
  0x66   : > { %p4526_p12 = pnand %p4525_p6, %p4519_p1 }
  0x68   : > { %4529 = shalt.err (!%p4526_p12)
}
  0x69   : > { %s5266_s1 = smov 16   ;;  %s5267_s6 = smov 256  }
  0x6a   : > { %4083 = dma.hbm_to_vmem [thread:$0]  (!%p5265_p11), %s5245_s0, 8192, %s4780_s19, [#allocation4], %s5267_s6, %s5267_s6, %s5266_s1  }
  0x6b   : > { %p5268_p9 = scmp.ne.s32.totalorder %s5263_s10, 0 }
  0x6c   : > { %p5269_p5 = scmp.eq.s32.totalorder (!%p5268_p9), %s4748_s30, 0 }
  0x6d   : > { %231 = sbr.rel (%p5268_p9) target bundleno = 670 (0x29e), region = 32 }
  0x74   : > { %4583 = dma.done.wait (%p5269_p5), [#allocation4], 8192   ;;  %p5270_p8 = pmov %p5269_p5 }
  0x75   : > { %s237_s7 = sand.u32 1, %s4748_s30   ;;  %s4848_s20 = sand.u32 1, %s4600_s13  }
  0x76   : > { %4585 = vsyncadd (%p5270_p8), [#allocation4], 4294959104  ;;  %s3611_s21 = sshll.u32 %s4848_s20, 10  ;;  %s238_s27 = scalar_lea.sflag [#allocation7], %s237_s7 }
  0x77   : > { %s4851_s28 = scalar_lea.vmem [#allocation6], %s3611_s21  ;;  %p5271_p11 = scmp.ne.s32.totalorder %s5260_s8, 0 }
  0x79   : > { %4587 = dma.done.wait (%p5271_p11), %s238_s27, 16448  }
  0x7a   : > { %4589 = vsyncadd (%p5271_p11), %s238_s27, 4294950848  ;;  %v4154_v0 = vld [vmem:[%s4851_s28 + $0x4] ss:$16 sps:$4 sm:$0xff]   ;;  %v4156_v1 = vld [vmem:[%s4851_s28 + $0xc] ss:$16 sps:$4 sm:$0xff]   ;;  %s3612_s30 = sshll.u32 %s4848_s20, 2 }
  0x7b   : > { %1697 = vmatprep.subr.bf16.mxu0 %v4154_v0  ;;  %v4158_v2 = vld [vmem:[%s4851_s28] ss:$16 sps:$4 sm:$0xff]   ;;  %v4159_v3 = vld [vmem:[%s4851_s28 + $0x8] ss:$16 sps:$4 sm:$0xff]   ;;  %2083 = vmatprep.subr.bf16.mxu1 %v4156_v1  ;;  %v4160_v4 = vld [vmem:[%s4851_s28 + $0x24] ss:$16 sps:$4 sm:$0xff]  }
  0x7c   : > { %1698 = vmatpush1.bf16.msra.mxu0 %v4158_v2  ;;  %2084 = vmatpush1.bf16.msra.mxu1 %v4159_v3  ;;  %v4162_v5 = vld [vmem:[%s4851_s28 + $0x2c] ss:$16 sps:$4 sm:$0xff]   ;;  %v4164_v6 = vld [vmem:[%s4851_s28 + $0x20] ss:$16 sps:$4 sm:$0xff]   ;;  %v4165_v7 = vld [vmem:[%s4851_s28 + $0x28] ss:$16 sps:$4 sm:$0xff]  }
  0x7d   : > { %1699 = vmatprep.subr.bf16.mxu0 %v4160_v4  ;;  %2085 = vmatprep.subr.bf16.mxu1 %v4162_v5  ;;  %v4166_v8 = vld [vmem:[%s4851_s28 + $0x44] ss:$16 sps:$4 sm:$0xff]   ;;  %v4168_v9 = vld [vmem:[%s4851_s28 + $0x4c] ss:$16 sps:$4 sm:$0xff]   ;;  %v4170_v10 = vld [vmem:[%s4851_s28 + $0x40] ss:$16 sps:$4 sm:$0xff]  }
  0x7e   : > { %v4171_v11 = vld [vmem:[%s4851_s28 + $0x48] ss:$16 sps:$4 sm:$0xff]   ;;  %v4172_v12 = vld [vmem:[%s4851_s28 + $0x64] ss:$16 sps:$4 sm:$0xff]   ;;  %v4174_v13 = vld [vmem:[%s4851_s28 + $0x6c] ss:$16 sps:$4 sm:$0xff]  }
  0x7f   : > { %v4176_v14 = vld [vmem:[%s4851_s28 + $0x60] ss:$16 sps:$4 sm:$0xff]   ;;  %v4177_v15 = vld [vmem:[%s4851_s28 + $0x68] ss:$16 sps:$4 sm:$0xff]   ;;  %v4178_v16 = vld [vmem:[%s4851_s28 + $0x84] ss:$16 sps:$4 sm:$0xff]  }
  0x80   : > { %1700 = vmatpush1.bf16.msra.mxu0 %v4164_v6  ;;  %2086 = vmatpush1.bf16.msra.mxu1 %v4165_v7  ;;  %v4180_v17 = vld [vmem:[%s4851_s28 + $0x8c] ss:$16 sps:$4 sm:$0xff]   ;;  %v4182_v18 = vld [vmem:[%s4851_s28 + $0x80] ss:$16 sps:$4 sm:$0xff]   ;;  %v4183_v19 = vld [vmem:[%s4851_s28 + $0x88] ss:$16 sps:$4 sm:$0xff]  }
  0x81   : > { %1701 = vmatprep.subr.bf16.mxu0 %v4166_v8  ;;  %2087 = vmatprep.subr.bf16.mxu1 %v4168_v9  ;;  %v4184_v20 = vld [vmem:[%s4851_s28 + $0xa4] ss:$16 sps:$4 sm:$0xff]   ;;  %v4186_v21 = vld [vmem:[%s4851_s28 + $0xac] ss:$16 sps:$4 sm:$0xff]   ;;  %v4188_v22 = vld [vmem:[%s4851_s28 + $0xa0] ss:$16 sps:$4 sm:$0xff]  }
  0x82   : > { %v4189_v23 = vld [vmem:[%s4851_s28 + $0xa8] ss:$16 sps:$4 sm:$0xff]   ;;  %v4190_v24 = vld [vmem:[%s4851_s28 + $0xc4] ss:$16 sps:$4 sm:$0xff]   ;;  %v4192_v25 = vld [vmem:[%s4851_s28 + $0xcc] ss:$16 sps:$4 sm:$0xff]  }
  0x83   : > { %v4194_v26 = vld [vmem:[%s4851_s28 + $0xc0] ss:$16 sps:$4 sm:$0xff]   ;;  %v4195_v27 = vld [vmem:[%s4851_s28 + $0xc8] ss:$16 sps:$4 sm:$0xff]   ;;  %v4196_v28 = vld [vmem:[%s4851_s28 + $0xe4] ss:$16 sps:$4 sm:$0xff]  }
  0x84   : > { %1702 = vmatpush1.bf16.msra.mxu0 %v4170_v10  ;;  %2088 = vmatpush1.bf16.msra.mxu1 %v4171_v11  ;;  %v4198_v29 = vld [vmem:[%s4851_s28 + $0xec] ss:$16 sps:$4 sm:$0xff]   ;;  %v4200_v30 = vld [vmem:[%s4851_s28 + $0xe0] ss:$16 sps:$4 sm:$0xff]   ;;  %v4201_v31 = vld [vmem:[%s4851_s28 + $0xe8] ss:$16 sps:$4 sm:$0xff]  }
  0x85   : > { %1703 = vmatprep.subr.bf16.mxu0 %v4172_v12  ;;  %2089 = vmatprep.subr.bf16.mxu1 %v4174_v13  ;;  %v4202_v32 = vld [vmem:[%s4851_s28 + $0x104] ss:$16 sps:$4 sm:$0xff]   ;;  %v4204_v33 = vld [vmem:[%s4851_s28 + $0x10c] ss:$16 sps:$4 sm:$0xff]   ;;  %v4206_v34 = vld [vmem:[%s4851_s28 + $0x100] ss:$16 sps:$4 sm:$0xff]  }
  0x86   : > { %v4207_v35 = vld [vmem:[%s4851_s28 + $0x108] ss:$16 sps:$4 sm:$0xff]   ;;  %v4208_v36 = vld [vmem:[%s4851_s28 + $0x124] ss:$16 sps:$4 sm:$0xff]   ;;  %v4210_v37 = vld [vmem:[%s4851_s28 + $0x12c] ss:$16 sps:$4 sm:$0xff]  }
  0x87   : > { %v4212_v38 = vld [vmem:[%s4851_s28 + $0x120] ss:$16 sps:$4 sm:$0xff]   ;;  %v4213_v39 = vld [vmem:[%s4851_s28 + $0x128] ss:$16 sps:$4 sm:$0xff]   ;;  %v4214_v40 = vld [vmem:[%s4851_s28 + $0x144] ss:$16 sps:$4 sm:$0xff]  }
  0x88   : > { %1704 = vmatpush1.bf16.msra.mxu0 %v4176_v14  ;;  %2090 = vmatpush1.bf16.msra.mxu1 %v4177_v15  ;;  %v4216_v41 = vld [vmem:[%s4851_s28 + $0x14c] ss:$16 sps:$4 sm:$0xff]   ;;  %v4218_v42 = vld [vmem:[%s4851_s28 + $0x140] ss:$16 sps:$4 sm:$0xff]   ;;  %v4219_v43 = vld [vmem:[%s4851_s28 + $0x148] ss:$16 sps:$4 sm:$0xff]  }
  0x89   : > { %1705 = vmatprep.subr.bf16.mxu0 %v4178_v16  ;;  %2091 = vmatprep.subr.bf16.mxu1 %v4180_v17  ;;  %v4220_v44 = vld [vmem:[%s4851_s28 + $0x164] ss:$16 sps:$4 sm:$0xff]   ;;  %v4222_v45 = vld [vmem:[%s4851_s28 + $0x16c] ss:$16 sps:$4 sm:$0xff]   ;;  %v4224_v46 = vld [vmem:[%s4851_s28 + $0x160] ss:$16 sps:$4 sm:$0xff]  }
  0x8a   : > { %v4225_v47 = vld [vmem:[%s4851_s28 + $0x168] ss:$16 sps:$4 sm:$0xff]   ;;  %v4252_v48 = vld [vmem:[#allocation3 + $0x4] ss:$16 sps:$4 sm:$0xff]   ;;  %v4228_v50 = vld [vmem:[%s4851_s28 + $0x18c] ss:$16 sps:$4 sm:$0xff]  }
  0x8b   : > { %v4226_v49 = vld [vmem:[%s4851_s28 + $0x184] ss:$16 sps:$4 sm:$0xff]   ;;  %1729 = vmatprep.mubr.bf16.mxu0 %v4252_v48  ;;  %2115 = vmatprep.mubr.bf16.mxu1 %v4252_v48  ;;  %v4230_v51 = vld [vmem:[%s4851_s28 + $0x180] ss:$16 sps:$4 sm:$0xff]   ;;  %v4231_v52 = vld [vmem:[%s4851_s28 + $0x188] ss:$16 sps:$4 sm:$0xff]  }
  0x8c   : > { %1706 = vmatpush1.bf16.msra.mxu0 %v4182_v18  ;;  %2092 = vmatpush1.bf16.msra.mxu1 %v4183_v19  ;;  %v4232_v53 = vld [vmem:[%s4851_s28 + $0x1a4] ss:$16 sps:$4 sm:$0xff]   ;;  %v4234_v54 = vld [vmem:[%s4851_s28 + $0x1ac] ss:$16 sps:$4 sm:$0xff]   ;;  %v4236_v55 = vld [vmem:[%s4851_s28 + $0x1a0] ss:$16 sps:$4 sm:$0xff]  }
  0x8d   : > { %1707 = vmatprep.subr.bf16.mxu0 %v4184_v20  ;;  %2093 = vmatprep.subr.bf16.mxu1 %v4186_v21  ;;  %v4237_v56 = vld [vmem:[%s4851_s28 + $0x1a8] ss:$16 sps:$4 sm:$0xff]   ;;  %v4238_v57 = vld [vmem:[%s4851_s28 + $0x1c4] ss:$16 sps:$4 sm:$0xff]   ;;  %v4240_v58 = vld [vmem:[%s4851_s28 + $0x1cc] ss:$16 sps:$4 sm:$0xff]  }
  0x8e   : > { %v4242_v59 = vld [vmem:[%s4851_s28 + $0x1c0] ss:$16 sps:$4 sm:$0xff]   ;;  %v4243_v60 = vld [vmem:[%s4851_s28 + $0x1c8] ss:$16 sps:$4 sm:$0xff]   ;;  %v4244_v61 = vld [vmem:[%s4851_s28 + $0x1e4] ss:$16 sps:$4 sm:$0xff]  }
  0x8f   : > { %v4246_v62 = vld [vmem:[%s4851_s28 + $0x1ec] ss:$16 sps:$4 sm:$0xff]   ;;  %v4248_v63 = vld [vmem:[%s4851_s28 + $0x1e0] ss:$16 sps:$4 sm:$0xff]   ;;  %v4249_v0 = vld [vmem:[%s4851_s28 + $0x1e8] ss:$16 sps:$4 sm:$0xff]  }
  0x90   : > { %1708 = vmatpush1.bf16.msra.mxu0 %v4188_v22  ;;  %2094 = vmatpush1.bf16.msra.mxu1 %v4189_v23  ;;  %v4255_v1 = vld [vmem:[%s4851_s28 + $0x204] ss:$16 sps:$4 sm:$0xff]   ;;  %v4258_v2 = vld [vmem:[%s4851_s28 + $0x20c] ss:$16 sps:$4 sm:$0xff]   ;;  %v4250_v3 = vld [vmem:[#allocation3] ss:$16 sps:$4 sm:$0xff]  }
  0x91   : > { %1709 = vmatprep.subr.bf16.mxu0 %v4190_v24  ;;  %2095 = vmatprep.subr.bf16.mxu1 %v4192_v25  ;;  %v4253_v4 = vld [vmem:[%s4851_s28 + $0x200] ss:$16 sps:$4 sm:$0xff]   ;;  %v4256_v5 = vld [vmem:[%s4851_s28 + $0x208] ss:$16 sps:$4 sm:$0xff]   ;;  %v4259_v6 = vld [vmem:[#allocation3 + $0x24] ss:$16 sps:$4 sm:$0xff]  }
  0x92   : > { %v4264_v7 = vld [vmem:[%s4851_s28 + $0x224] ss:$16 sps:$4 sm:$0xff]   ;;  %v4267_v8 = vld [vmem:[%s4851_s28 + $0x22c] ss:$16 sps:$4 sm:$0xff]   ;;  %v4262_v9 = vld [vmem:[%s4851_s28 + $0x220] ss:$16 sps:$4 sm:$0xff]  }
  0x93   : > { %v4265_v10 = vld [vmem:[%s4851_s28 + $0x228] ss:$16 sps:$4 sm:$0xff]   ;;  %v4273_v11 = vld [vmem:[%s4851_s28 + $0x244] ss:$16 sps:$4 sm:$0xff]   ;;  %v4276_v12 = vld [vmem:[%s4851_s28 + $0x24c] ss:$16 sps:$4 sm:$0xff]  }
  0x94   : > { %1710 = vmatpush1.bf16.msra.mxu0 %v4194_v26  ;;  %2096 = vmatpush1.bf16.msra.mxu1 %v4195_v27  ;;  %v4261_v13 = vld [vmem:[#allocation3 + $0x20] ss:$16 sps:$4 sm:$0xff]   ;;  %v4268_v14 = vld [vmem:[#allocation3 + $0x44] ss:$16 sps:$4 sm:$0xff]   ;;  %v4274_v16 = vld [vmem:[%s4851_s28 + $0x248] ss:$16 sps:$4 sm:$0xff]  }
  0x95   : > { %1711 = vmatprep.subr.bf16.mxu0 %v4196_v28  ;;  %2097 = vmatprep.subr.bf16.mxu1 %v4198_v29  ;;  %v4271_v15 = vld [vmem:[%s4851_s28 + $0x240] ss:$16 sps:$4 sm:$0xff]   ;;  %v4282_v17 = vld [vmem:[%s4851_s28 + $0x264] ss:$16 sps:$4 sm:$0xff]   ;;  %v4285_v18 = vld [vmem:[%s4851_s28 + $0x26c] ss:$16 sps:$4 sm:$0xff]  }
  0x96   : > { %v4280_v19 = vld [vmem:[%s4851_s28 + $0x260] ss:$16 sps:$4 sm:$0xff]   ;;  %v4283_v20 = vld [vmem:[%s4851_s28 + $0x268] ss:$16 sps:$4 sm:$0xff]   ;;  %v4291_v21 = vld [vmem:[%s4851_s28 + $0x284] ss:$16 sps:$4 sm:$0xff]  }
  0x97   : > { %v4294_v22 = vld [vmem:[%s4851_s28 + $0x28c] ss:$16 sps:$4 sm:$0xff]   ;;  %v4270_v23 = vld [vmem:[#allocation3 + $0x40] ss:$16 sps:$4 sm:$0xff]   ;;  %v4277_v24 = vld [vmem:[#allocation3 + $0x64] ss:$16 sps:$4 sm:$0xff]  }
  0x98   : > { %1712 = vmatpush1.bf16.msra.mxu0 %v4200_v30  ;;  %2098 = vmatpush1.bf16.msra.mxu1 %v4201_v31  ;;  %v4289_v25 = vld [vmem:[%s4851_s28 + $0x280] ss:$16 sps:$4 sm:$0xff]   ;;  %v4292_v26 = vld [vmem:[%s4851_s28 + $0x288] ss:$16 sps:$4 sm:$0xff]   ;;  %v4300_v27 = vld [vmem:[%s4851_s28 + $0x2a4] ss:$16 sps:$4 sm:$0xff]  }
  0x99   : > { %1713 = vmatprep.subr.bf16.mxu0 %v4202_v32  ;;  %2099 = vmatprep.subr.bf16.mxu1 %v4204_v33  ;;  %v4303_v28 = vld [vmem:[%s4851_s28 + $0x2ac] ss:$16 sps:$4 sm:$0xff]   ;;  %v4298_v29 = vld [vmem:[%s4851_s28 + $0x2a0] ss:$16 sps:$4 sm:$0xff]   ;;  %v4301_v30 = vld [vmem:[%s4851_s28 + $0x2a8] ss:$16 sps:$4 sm:$0xff]  }
  0x9a   : > { %v4309_v31 = vld [vmem:[%s4851_s28 + $0x2c4] ss:$16 sps:$4 sm:$0xff]   ;;  %v4312_v32 = vld [vmem:[%s4851_s28 + $0x2cc] ss:$16 sps:$4 sm:$0xff]   ;;  %v4279_v33 = vld [vmem:[#allocation3 + $0x60] ss:$16 sps:$4 sm:$0xff]  }
  0x9b   : > { %v4339_v48 = vld [vmem:[%s4851_s28 + $0x32c] ss:$16 sps:$4 sm:$0xff]   ;;  %s250_s8 = scalar_lea.vmem [#allocation8], %s3612_s30  ;;  %s3613_s10 = sshll.u32 %s4848_s20, 9 }
  0x9c   : > { %1714 = vmatpush1.bf16.msra.mxu0 %v4206_v34  ;;  %2100 = vmatpush1.bf16.msra.mxu1 %v4207_v35  ;;  %v4286_v34 = vld [vmem:[#allocation3 + $0x84] ss:$16 sps:$4 sm:$0xff]   ;;  %v4307_v35 = vld [vmem:[%s4851_s28 + $0x2c0] ss:$16 sps:$4 sm:$0xff]   ;;  %s5003_s19 = scalar_lea.vmem [#allocation9], %s3613_s10  ;;  %s3941_s11 = sshll.u32 %s4608_s15, 8 }
  0x9d   : > { %1715 = vmatprep.subr.bf16.mxu0 %v4208_v36  ;;  %2101 = vmatprep.subr.bf16.mxu1 %v4210_v37  ;;  %v4310_v36 = vld [vmem:[%s4851_s28 + $0x2c8] ss:$16 sps:$4 sm:$0xff]   ;;  %v4318_v37 = vld [vmem:[%s4851_s28 + $0x2e4] ss:$16 sps:$4 sm:$0xff]   ;;  %s3471_s22 = sshll.u32 %s5003_s19, 4  ;;  %s5190_s23 = scalar_lea.hbm %s5248_s3, %s3941_s11  ;;  %s5192_s22 = int_to_ptr.vmem [resolvable:$true] %s3471_s22 }
  0x9e   : > { %s3455_s5 = scalar_lea.sflag [#allocation5], %s4848_s20  ;;  %s4530_s1 = scalar_lea.vmem %s5192_s22, 8192 }
  0x9f   : > { %p4531_p10 = scmp.ne.s32.totalorder %s5192_s22, %s4530_s1  ;;  %p5272_p13 = scmp.ne.s32.totalorder %s5261_s29, 0 }
  0xa0   : > { %1716 = vmatpush1.bf16.msra.mxu0 %v4212_v38  ;;  %2102 = vmatpush1.bf16.msra.mxu1 %v4213_v39  ;;  %v4321_v38 = vld [vmem:[%s4851_s28 + $0x2ec] ss:$16 sps:$4 sm:$0xff]   ;;  %v4316_v39 = vld [vmem:[%s4851_s28 + $0x2e0] ss:$16 sps:$4 sm:$0xff]   ;;  %s4624_s6 = smov [#allocation9]  }
  0xa1   : > { %1717 = vmatprep.subr.bf16.mxu0 %v4214_v40  ;;  %2103 = vmatprep.subr.bf16.mxu1 %v4216_v41  ;;  %v4319_v40 = vld [vmem:[%s4851_s28 + $0x2e8] ss:$16 sps:$4 sm:$0xff]   ;;  %v4327_v41 = vld [vmem:[%s4851_s28 + $0x304] ss:$16 sps:$4 sm:$0xff]   ;;  %p4532_p0 = pnand %p4531_p10, %p5272_p13  ;;  %s4534_s25 = sshll.u32 %s4624_s6, 4  ;;  %s4535_s25 = int_to_ptr.vmem [resolvable:$false] %s4534_s25 }
  0xa2   : > { %s4536_s26 = scalar_lea.vmem %s4535_s25, 16384  ;;  %p4537_p3 = scmp.lt.s32.totalorder %s5192_s22, %s4535_s25 }
  0xa3   : > { %p4533_p7 = pneg %p4532_p0  ;;  %p4538_p1 = scmp.lt.s32.totalorder %s4536_s26, %s4530_s1 }
  0xa4   : > { %1718 = vmatpush1.bf16.msra.mxu0 %v4218_v42  ;;  %2104 = vmatpush1.bf16.msra.mxu1 %v4219_v43  ;;  %v4330_v42 = vld [vmem:[%s4851_s28 + $0x30c] ss:$16 sps:$4 sm:$0xff]   ;;  %v4288_v43 = vld [vmem:[#allocation3 + $0x80] ss:$16 sps:$4 sm:$0xff]  }
  0xa5   : > { %1719 = vmatprep.subr.bf16.mxu0 %v4220_v44  ;;  %2105 = vmatprep.subr.bf16.mxu1 %v4222_v45  ;;  %v4295_v44 = vld [vmem:[#allocation3 + $0xa4] ss:$16 sps:$4 sm:$0xff]   ;;  %v4325_v45 = vld [vmem:[%s4851_s28 + $0x300] ss:$16 sps:$4 sm:$0xff]   ;;  %p4539_p4 = por %p4538_p1, %p4537_p3 }
  0xa7   : > { %p4540_p2 = pnand %p4539_p4, %p4533_p7 }
  0xa8   : > { %1720 = vmatpush1.bf16.msra.mxu0 %v4224_v46  ;;  %2106 = vmatpush1.bf16.msra.mxu1 %v4225_v47  ;;  %v4328_v46 = vld [vmem:[%s4851_s28 + $0x308] ss:$16 sps:$4 sm:$0xff]   ;;  %v4336_v47 = vld [vmem:[%s4851_s28 + $0x324] ss:$16 sps:$4 sm:$0xff]  }
  0xa9   : > { %1721 = vmatprep.subr.bf16.mxu0 %v4226_v49  ;;  %2107 = vmatprep.subr.bf16.mxu1 %v4228_v50  ;;  %v4334_v49 = vld [vmem:[%s4851_s28 + $0x320] ss:$16 sps:$4 sm:$0xff]   ;;  %v4337_v50 = vld [vmem:[%s4851_s28 + $0x328] ss:$16 sps:$4 sm:$0xff]  }
  0xac   : > { %1722 = vmatpush1.bf16.msra.mxu0 %v4230_v51  ;;  %2108 = vmatpush1.bf16.msra.mxu1 %v4231_v52  ;;  %v4345_v51 = vld [vmem:[%s4851_s28 + $0x344] ss:$16 sps:$4 sm:$0xff]   ;;  %v4348_v52 = vld [vmem:[%s4851_s28 + $0x34c] ss:$16 sps:$4 sm:$0xff]  }
  0xad   : > { %1723 = vmatprep.subr.bf16.mxu0 %v4232_v53  ;;  %2109 = vmatprep.subr.bf16.mxu1 %v4234_v54  ;;  %v4297_v53 = vld [vmem:[#allocation3 + $0xa0] ss:$16 sps:$4 sm:$0xff]   ;;  %v4304_v54 = vld [vmem:[#allocation3 + $0xc4] ss:$16 sps:$4 sm:$0xff]  }
  0xb0   : > { %1724 = vmatpush1.bf16.msra.mxu0 %v4236_v55  ;;  %2110 = vmatpush1.bf16.msra.mxu1 %v4237_v56  ;;  %v4343_v55 = vld [vmem:[%s4851_s28 + $0x340] ss:$16 sps:$4 sm:$0xff]   ;;  %v4346_v56 = vld [vmem:[%s4851_s28 + $0x348] ss:$16 sps:$4 sm:$0xff]  }
  0xb1   : > { %1725 = vmatprep.subr.bf16.mxu0 %v4238_v57  ;;  %2111 = vmatprep.subr.bf16.mxu1 %v4240_v58  ;;  %v4354_v57 = vld [vmem:[%s4851_s28 + $0x364] ss:$16 sps:$4 sm:$0xff]   ;;  %v4357_v58 = vld [vmem:[%s4851_s28 + $0x36c] ss:$16 sps:$4 sm:$0xff]  }
  0xb4   : > { %1726 = vmatpush1.bf16.msra.mxu0 %v4242_v59  ;;  %2112 = vmatpush1.bf16.msra.mxu1 %v4243_v60  ;;  %v4352_v59 = vld [vmem:[%s4851_s28 + $0x360] ss:$16 sps:$4 sm:$0xff]   ;;  %v4355_v60 = vld [vmem:[%s4851_s28 + $0x368] ss:$16 sps:$4 sm:$0xff]  }
  0xb5   : > { %1727 = vmatprep.subr.bf16.mxu0 %v4244_v61  ;;  %2113 = vmatprep.subr.bf16.mxu1 %v4246_v62  ;;  %v4363_v61 = vld [vmem:[%s4851_s28 + $0x384] ss:$16 sps:$4 sm:$0xff]   ;;  %v4366_v62 = vld [vmem:[%s4851_s28 + $0x38c] ss:$16 sps:$4 sm:$0xff]  }
  0xb8   : > { %1728 = vmatpush1.bf16.msra.mxu0 %v4248_v63  ;;  %2114 = vmatpush1.bf16.msra.mxu1 %v4249_v0  ;;  %v4306_v63 = vld [vmem:[#allocation3 + $0xc0] ss:$16 sps:$4 sm:$0xff]   ;;  %v4313_v0 = vld [vmem:[#allocation3 + $0xe4] ss:$16 sps:$4 sm:$0xff]  }
  0xb9   : > { %1890 = vmatprep.subr.bf16.mxu0 %v4255_v1  ;;  %2276 = vmatprep.subr.bf16.mxu1 %v4258_v2  ;;  %v4361_v1 = vld [vmem:[%s4851_s28 + $0x380] ss:$16 sps:$4 sm:$0xff]   ;;  %v4364_v2 = vld [vmem:[%s4851_s28 + $0x388] ss:$16 sps:$4 sm:$0xff]  }
  0xbb   : > { %1730 = vmatmul.mubr.bf16.vlgmr.msra.gmra.mrb[0].mxu0 %v4250_v3  ;;  %2116 = vmatmul.mubr.bf16.vlgmr.msra.gmra.mrb[0].mxu1 %v4250_v3  ;;  %v4372_v3 = vld [vmem:[%s4851_s28 + $0x3a4] ss:$16 sps:$4 sm:$0xff]  }
  0xbc   : > { %1891 = vmatpush1.bf16.msra.mxu0 %v4253_v4  ;;  %2277 = vmatpush1.bf16.msra.mxu1 %v4256_v5  ;;  %v4375_v4 = vld [vmem:[%s4851_s28 + $0x3ac] ss:$16 sps:$4 sm:$0xff]   ;;  %v4370_v5 = vld [vmem:[%s4851_s28 + $0x3a0] ss:$16 sps:$4 sm:$0xff]  }
  0xbd   : > { %1739 = vmatprep.mubr.bf16.mxu0 %v4259_v6  ;;  %2125 = vmatprep.mubr.bf16.mxu1 %v4259_v6  ;;  %v4373_v6 = vld [vmem:[%s4851_s28 + $0x3a8] ss:$16 sps:$4 sm:$0xff]  }
  0xbe   : > { %1892 = vmatprep.subr.bf16.mxu0 %v4264_v7  ;;  %2278 = vmatprep.subr.bf16.mxu1 %v4267_v8  ;;  %v4381_v7 = vld [vmem:[%s4851_s28 + $0x3c4] ss:$16 sps:$4 sm:$0xff]   ;;  %v4315_v8 = vld [vmem:[#allocation3 + $0xe0] ss:$16 sps:$4 sm:$0xff]  }
  0xc0   : > { %1893 = vmatpush1.bf16.msra.mxu0 %v4262_v9  ;;  %2279 = vmatpush1.bf16.msra.mxu1 %v4265_v10  ;;  %v4384_v9 = vld [vmem:[%s4851_s28 + $0x3cc] ss:$16 sps:$4 sm:$0xff]   ;;  %v4322_v10 = vld [vmem:[#allocation3 + $0x104] ss:$16 sps:$4 sm:$0xff]  }
  0xc1   : > { %1894 = vmatprep.subr.bf16.mxu0 %v4273_v11  ;;  %2280 = vmatprep.subr.bf16.mxu1 %v4276_v12  ;;  %v4379_v11 = vld [vmem:[%s4851_s28 + $0x3c0] ss:$16 sps:$4 sm:$0xff]   ;;  %v4382_v12 = vld [vmem:[%s4851_s28 + $0x3c8] ss:$16 sps:$4 sm:$0xff]  }
  0xc3   : > { %1740 = vmatmul.mubr.bf16.gmra.mrb[4].mxu0 %v4261_v13  ;;  %2126 = vmatmul.mubr.bf16.gmra.mrb[4].mxu1 %v4261_v13  ;;  %v4390_v13 = vld [vmem:[%s4851_s28 + $0x3e4] ss:$16 sps:$4 sm:$0xff]  }
  0xc4   : > { %1749 = vmatprep.mubr.bf16.mxu0 %v4268_v14  ;;  %2135 = vmatprep.mubr.bf16.mxu1 %v4268_v14  ;;  %v4393_v14 = vld [vmem:[%s4851_s28 + $0x3ec] ss:$16 sps:$4 sm:$0xff]  }
  0xc5   : > { %1895 = vmatpush1.bf16.msra.mxu0 %v4271_v15  ;;  %2281 = vmatpush1.bf16.msra.mxu1 %v4274_v16  ;;  %v4388_v15 = vld [vmem:[%s4851_s28 + $0x3e0] ss:$16 sps:$4 sm:$0xff]   ;;  %v4391_v16 = vld [vmem:[%s4851_s28 + $0x3e8] ss:$16 sps:$4 sm:$0xff]  }
  0xc6   : > { %1896 = vmatprep.subr.bf16.mxu0 %v4282_v17  ;;  %2282 = vmatprep.subr.bf16.mxu1 %v4285_v18  ;;  %v4324_v17 = vld [vmem:[#allocation3 + $0x100] ss:$16 sps:$4 sm:$0xff]   ;;  %v4331_v18 = vld [vmem:[#allocation3 + $0x124] ss:$16 sps:$4 sm:$0xff]  }
  0xc9   : > { %1897 = vmatpush1.bf16.msra.mxu0 %v4280_v19  ;;  %2283 = vmatpush1.bf16.msra.mxu1 %v4283_v20  ;;  %v4333_v19 = vld [vmem:[#allocation3 + $0x120] ss:$16 sps:$4 sm:$0xff]   ;;  %v4340_v20 = vld [vmem:[#allocation3 + $0x144] ss:$16 sps:$4 sm:$0xff]  }
  0xca   : > { %1898 = vmatprep.subr.bf16.mxu0 %v4291_v21  ;;  %2284 = vmatprep.subr.bf16.mxu1 %v4294_v22  ;;  %v4342_v21 = vld [vmem:[#allocation3 + $0x140] ss:$16 sps:$4 sm:$0xff]   ;;  %v4349_v22 = vld [vmem:[#allocation3 + $0x164] ss:$16 sps:$4 sm:$0xff]  }
  0xcb   : > { %1750 = vmatmul.mubr.bf16.gmra.mrb[8].mxu0 %v4270_v23  ;;  %2136 = vmatmul.mubr.bf16.gmra.mrb[8].mxu1 %v4270_v23  ;;  %v4351_v23 = vld [vmem:[#allocation3 + $0x160] ss:$16 sps:$4 sm:$0xff]  }
  0xcc   : > { %1759 = vmatprep.mubr.bf16.mxu0 %v4277_v24  ;;  %2145 = vmatprep.mubr.bf16.mxu1 %v4277_v24  ;;  %v4358_v24 = vld [vmem:[#allocation3 + $0x184] ss:$16 sps:$4 sm:$0xff]  }
  0xcd   : > { %1899 = vmatpush1.bf16.msra.mxu0 %v4289_v25  ;;  %2285 = vmatpush1.bf16.msra.mxu1 %v4292_v26  ;;  %v4360_v25 = vld [vmem:[#allocation3 + $0x180] ss:$16 sps:$4 sm:$0xff]   ;;  %v4367_v26 = vld [vmem:[#allocation3 + $0x1a4] ss:$16 sps:$4 sm:$0xff]  }
  0xce   : > { %1900 = vmatprep.subr.bf16.mxu0 %v4300_v27  ;;  %2286 = vmatprep.subr.bf16.mxu1 %v4303_v28  ;;  %v4369_v27 = vld [vmem:[#allocation3 + $0x1a0] ss:$16 sps:$4 sm:$0xff]   ;;  %v4376_v28 = vld [vmem:[#allocation3 + $0x1c4] ss:$16 sps:$4 sm:$0xff]  }
  0xd1   : > { %1901 = vmatpush1.bf16.msra.mxu0 %v4298_v29  ;;  %2287 = vmatpush1.bf16.msra.mxu1 %v4301_v30  ;;  %v4378_v29 = vld [vmem:[#allocation3 + $0x1c0] ss:$16 sps:$4 sm:$0xff]   ;;  %v4385_v30 = vld [vmem:[#allocation3 + $0x1e4] ss:$16 sps:$4 sm:$0xff]  }
  0xd2   : > { %1902 = vmatprep.subr.bf16.mxu0 %v4309_v31  ;;  %2288 = vmatprep.subr.bf16.mxu1 %v4312_v32  ;;  %v4387_v31 = vld [vmem:[#allocation3 + $0x1e0] ss:$16 sps:$4 sm:$0xff]   ;;  %v4396_v32 = vld [vmem:[#allocation3 + $0xc] ss:$16 sps:$4 sm:$0xff]  }
  0xd3   : > { %1760 = vmatmul.mubr.bf16.gmra.mrb[12].mxu0 %v4279_v33  ;;  %2146 = vmatmul.mubr.bf16.gmra.mrb[12].mxu1 %v4279_v33  ;;  %v4394_v33 = vld [vmem:[#allocation3 + $0x8] ss:$16 sps:$4 sm:$0xff]  }
  0xd4   : > { %1769 = vmatprep.mubr.bf16.mxu0 %v4286_v34  ;;  %2155 = vmatprep.mubr.bf16.mxu1 %v4286_v34  ;;  %v4397_v34 = vld [vmem:[#allocation3 + $0x2c] ss:$16 sps:$4 sm:$0xff]  }
  0xd5   : > { %1903 = vmatpush1.bf16.msra.mxu0 %v4307_v35  ;;  %2289 = vmatpush1.bf16.msra.mxu1 %v4310_v36  ;;  %v4399_v35 = vld [vmem:[#allocation3 + $0x28] ss:$16 sps:$4 sm:$0xff]   ;;  %v4400_v36 = vld [vmem:[#allocation3 + $0x4c] ss:$16 sps:$4 sm:$0xff]  }
  0xd6   : > { %1904 = vmatprep.subr.bf16.mxu0 %v4318_v37  ;;  %2290 = vmatprep.subr.bf16.mxu1 %v4321_v38  ;;  %v4402_v37 = vld [vmem:[#allocation3 + $0x48] ss:$16 sps:$4 sm:$0xff]   ;;  %v4403_v38 = vld [vmem:[#allocation3 + $0x6c] ss:$16 sps:$4 sm:$0xff]  }
  0xd9   : > { %1905 = vmatpush1.bf16.msra.mxu0 %v4316_v39  ;;  %2291 = vmatpush1.bf16.msra.mxu1 %v4319_v40  ;;  %v4405_v39 = vld [vmem:[#allocation3 + $0x68] ss:$16 sps:$4 sm:$0xff]   ;;  %v4406_v40 = vld [vmem:[#allocation3 + $0x8c] ss:$16 sps:$4 sm:$0xff]  }
  0xda   : > { %1906 = vmatprep.subr.bf16.mxu0 %v4327_v41  ;;  %2292 = vmatprep.subr.bf16.mxu1 %v4330_v42  ;;  %v4408_v41 = vld [vmem:[#allocation3 + $0x88] ss:$16 sps:$4 sm:$0xff]   ;;  %v4409_v42 = vld [vmem:[#allocation3 + $0xac] ss:$16 sps:$4 sm:$0xff]  }
  0xdb   : > { %1770 = vmatmul.mubr.bf16.gmra.mrb[16].mxu0 %v4288_v43  ;;  %2156 = vmatmul.mubr.bf16.gmra.mrb[16].mxu1 %v4288_v43  ;;  %v4411_v43 = vld [vmem:[#allocation3 + $0xa8] ss:$16 sps:$4 sm:$0xff]  }
  0xdc   : > { %1779 = vmatprep.mubr.bf16.mxu0 %v4295_v44  ;;  %2165 = vmatprep.mubr.bf16.mxu1 %v4295_v44  ;;  %v4412_v44 = vld [vmem:[#allocation3 + $0xcc] ss:$16 sps:$4 sm:$0xff]  }
  0xdd   : > { %1907 = vmatpush1.bf16.msra.mxu0 %v4325_v45  ;;  %2293 = vmatpush1.bf16.msra.mxu1 %v4328_v46  ;;  %v4414_v45 = vld [vmem:[#allocation3 + $0xc8] ss:$16 sps:$4 sm:$0xff]   ;;  %v4415_v46 = vld [vmem:[#allocation3 + $0xec] ss:$16 sps:$4 sm:$0xff]  }
  0xde   : > { %1908 = vmatprep.subr.bf16.mxu0 %v4336_v47  ;;  %2294 = vmatprep.subr.bf16.mxu1 %v4339_v48  ;;  %v4417_v47 = vld [vmem:[#allocation3 + $0xe8] ss:$16 sps:$4 sm:$0xff]   ;;  %v4418_v48 = vld [vmem:[#allocation3 + $0x10c] ss:$16 sps:$4 sm:$0xff]  }
  0xe1   : > { %1909 = vmatpush1.bf16.msra.mxu0 %v4334_v49  ;;  %2295 = vmatpush1.bf16.msra.mxu1 %v4337_v50  ;;  %v4420_v49 = vld [vmem:[#allocation3 + $0x108] ss:$16 sps:$4 sm:$0xff]   ;;  %v4421_v50 = vld [vmem:[#allocation3 + $0x12c] ss:$16 sps:$4 sm:$0xff]  }
  0xe2   : > { %1910 = vmatprep.subr.bf16.mxu0 %v4345_v51  ;;  %2296 = vmatprep.subr.bf16.mxu1 %v4348_v52  ;;  %v4423_v51 = vld [vmem:[#allocation3 + $0x128] ss:$16 sps:$4 sm:$0xff]   ;;  %v4424_v52 = vld [vmem:[#allocation3 + $0x14c] ss:$16 sps:$4 sm:$0xff]  }
  0xe3   : > { %1780 = vmatmul.mubr.bf16.gmra.mrb[20].mxu0 %v4297_v53  ;;  %2166 = vmatmul.mubr.bf16.gmra.mrb[20].mxu1 %v4297_v53  ;;  %v4426_v53 = vld [vmem:[#allocation3 + $0x148] ss:$16 sps:$4 sm:$0xff]  }
  0xe4   : > { %1789 = vmatprep.mubr.bf16.mxu0 %v4304_v54  ;;  %2175 = vmatprep.mubr.bf16.mxu1 %v4304_v54  ;;  %v4427_v54 = vld [vmem:[#allocation3 + $0x16c] ss:$16 sps:$4 sm:$0xff]  }
  0xe5   : > { %1911 = vmatpush1.bf16.msra.mxu0 %v4343_v55  ;;  %2297 = vmatpush1.bf16.msra.mxu1 %v4346_v56  ;;  %v4429_v55 = vld [vmem:[#allocation3 + $0x168] ss:$16 sps:$4 sm:$0xff]   ;;  %v4430_v56 = vld [vmem:[#allocation3 + $0x18c] ss:$16 sps:$4 sm:$0xff]  }
  0xe6   : > { %1912 = vmatprep.subr.bf16.mxu0 %v4354_v57  ;;  %2298 = vmatprep.subr.bf16.mxu1 %v4357_v58  ;;  %v4432_v57 = vld [vmem:[#allocation3 + $0x188] ss:$16 sps:$4 sm:$0xff]   ;;  %v4433_v58 = vld [vmem:[#allocation3 + $0x1ac] ss:$16 sps:$4 sm:$0xff]  }
  0xe9   : > { %1913 = vmatpush1.bf16.msra.mxu0 %v4352_v59  ;;  %2299 = vmatpush1.bf16.msra.mxu1 %v4355_v60  ;;  %v4435_v59 = vld [vmem:[#allocation3 + $0x1a8] ss:$16 sps:$4 sm:$0xff]   ;;  %v4436_v60 = vld [vmem:[#allocation3 + $0x1cc] ss:$16 sps:$4 sm:$0xff]  }
  0xea   : > { %1914 = vmatprep.subr.bf16.mxu0 %v4363_v61  ;;  %2300 = vmatprep.subr.bf16.mxu1 %v4366_v62  ;;  %v4438_v61 = vld [vmem:[#allocation3 + $0x1c8] ss:$16 sps:$4 sm:$0xff]   ;;  %v4439_v62 = vld [vmem:[#allocation3 + $0x1ec] ss:$16 sps:$4 sm:$0xff]  }
  0xeb   : > { %1790 = vmatmul.mubr.bf16.gmra.mrb[24].mxu0 %v4306_v63  ;;  %2176 = vmatmul.mubr.bf16.gmra.mrb[24].mxu1 %v4306_v63  ;;  %v4441_v63 = vld [vmem:[#allocation3 + $0x1e8] ss:$16 sps:$4 sm:$0xff]  }
  0xec   : > { %1799 = vmatprep.mubr.bf16.mxu0 %v4313_v0  ;;  %2185 = vmatprep.mubr.bf16.mxu1 %v4313_v0  ;;  %v2858_v0 = vlaneseq }
  0xed   : > { %1915 = vmatpush1.bf16.msra.mxu0 %v4361_v1  ;;  %2301 = vmatpush1.bf16.msra.mxu1 %v4364_v2 }
  0xee   : > { %1916 = vmatprep.subr.bf16.mxu0 %v4372_v3  ;;  %2302 = vmatprep.subr.bf16.mxu1 %v4375_v4  ;;  %v2859_v1 = vshrl.u32 %v2858_v0, 7  ;;  %v2856_v4 = vld [vmem:[%s250_s8] sm:$0xf] }
  0xf0   : > { %v2860_v2 = vsub.s32 0, %v2859_v1  ;;  %v2868_v3 = vsub.s32 2, %v2859_v1 }
  0xf1   : > { %1917 = vmatpush1.bf16.msra.mxu0 %v4370_v5  ;;  %2303 = vmatpush1.bf16.msra.mxu1 %v4373_v6  ;;  %v2864_v5 = vsub.s32 1, %v2859_v1  ;;  %v2872_v6 = vsub.s32 3, %v2859_v1 }
  0xf2   : > { %1918 = vmatprep.subr.bf16.mxu0 %v4381_v7  ;;  %2304 = vmatprep.subr.bf16.mxu1 %v4384_v9  ;;  %v4986_v7 = vrot.slane %v2856_v4, %v2860_v2 }
  0xf3   : > { %1800 = vmatmul.mubr.bf16.gmra.mrb[28].mxu0 %v4315_v8  ;;  %2186 = vmatmul.mubr.bf16.gmra.mrb[28].mxu1 %v4315_v8  ;;  %v4988_v8 = vrot.slane %v2856_v4, %v2868_v3  ;;  %v4990_v9 = vrot.slane %v2856_v4, %v2864_v5 }
  0xf4   : > { %1809 = vmatprep.mubr.bf16.mxu0 %v4322_v10  ;;  %2195 = vmatprep.mubr.bf16.mxu1 %v4322_v10  ;;  %v4992_v10 = vrot.slane %v2856_v4, %v2872_v6 }
  0xf5   : > { %1919 = vmatpush1.bf16.msra.mxu0 %v4379_v11  ;;  %2305 = vmatpush1.bf16.msra.mxu1 %v4382_v12 }
  0xf6   : > { %1920 = vmatprep.subr.bf16.mxu0 %v4390_v13  ;;  %2306 = vmatprep.subr.bf16.mxu1 %v4393_v14 }
  0xf9   : > { %1921 = vmatpush1.bf16.msra.mxu0 %v4388_v15  ;;  %2307 = vmatpush1.bf16.msra.mxu1 %v4391_v16 }
  0xfb   : > { %1810 = vmatmul.mubr.bf16.gmra.mrb[32].mxu0 %v4324_v17  ;;  %2196 = vmatmul.mubr.bf16.gmra.mrb[32].mxu1 %v4324_v17 }
  0xfc   : > { %1819 = vmatprep.mubr.bf16.mxu0 %v4331_v18  ;;  %2205 = vmatprep.mubr.bf16.mxu1 %v4331_v18 }
 0x103   : > { %1820 = vmatmul.mubr.bf16.gmra.mrb[36].mxu0 %v4333_v19  ;;  %2206 = vmatmul.mubr.bf16.gmra.mrb[36].mxu1 %v4333_v19 }
 0x104   : > { %1829 = vmatprep.mubr.bf16.mxu0 %v4340_v20  ;;  %2215 = vmatprep.mubr.bf16.mxu1 %v4340_v20 }
 0x10b   : > { %1830 = vmatmul.mubr.bf16.gmra.mrb[40].mxu0 %v4342_v21  ;;  %2216 = vmatmul.mubr.bf16.gmra.mrb[40].mxu1 %v4342_v21 }
 0x10c   : > { %1839 = vmatprep.mubr.bf16.mxu0 %v4349_v22  ;;  %2225 = vmatprep.mubr.bf16.mxu1 %v4349_v22 }
 0x113   : > { %1840 = vmatmul.mubr.bf16.gmra.mrb[44].mxu0 %v4351_v23  ;;  %2226 = vmatmul.mubr.bf16.gmra.mrb[44].mxu1 %v4351_v23 }
 0x114   : > { %1849 = vmatprep.mubr.bf16.mxu0 %v4358_v24  ;;  %2235 = vmatprep.mubr.bf16.mxu1 %v4358_v24 }
 0x11b   : > { %1850 = vmatmul.mubr.bf16.gmra.mrb[48].mxu0 %v4360_v25  ;;  %2236 = vmatmul.mubr.bf16.gmra.mrb[48].mxu1 %v4360_v25 }
 0x11c   : > { %1859 = vmatprep.mubr.bf16.mxu0 %v4367_v26  ;;  %2245 = vmatprep.mubr.bf16.mxu1 %v4367_v26 }
 0x123   : > { %1860 = vmatmul.mubr.bf16.gmra.mrb[52].mxu0 %v4369_v27  ;;  %2246 = vmatmul.mubr.bf16.gmra.mrb[52].mxu1 %v4369_v27 }
 0x124   : > { %1869 = vmatprep.mubr.bf16.mxu0 %v4376_v28  ;;  %2255 = vmatprep.mubr.bf16.mxu1 %v4376_v28 }
 0x12b   : > { %1870 = vmatmul.mubr.bf16.gmra.mrb[56].mxu0 %v4378_v29  ;;  %2256 = vmatmul.mubr.bf16.gmra.mrb[56].mxu1 %v4378_v29 }
 0x12c   : > { %1879 = vmatprep.mubr.bf16.mxu0 %v4385_v30  ;;  %2265 = vmatprep.mubr.bf16.mxu1 %v4385_v30 }
 0x133   : > { %1880 = vmatmul.mubr.bf16.gmra.mrb[60].mxu0 %v4387_v31  ;;  %2266 = vmatmul.mubr.bf16.gmra.mrb[60].mxu1 %v4387_v31 }
 0x134   : > { %1922 = vmatprep.mubr.bf16.mxu0 %v4396_v32  ;;  %2308 = vmatprep.mubr.bf16.mxu1 %v4396_v32 }
 0x13b   : > { %1923 = vmatmul.mubr.bf16.vlgmr.msra.gmra.mrb[0].mxu0 %v4394_v33  ;;  %2309 = vmatmul.mubr.bf16.vlgmr.msra.gmra.mrb[0].mxu1 %v4394_v33 }
 0x13c   : > { %1932 = vmatprep.mubr.bf16.mxu0 %v4397_v34  ;;  %2318 = vmatprep.mubr.bf16.mxu1 %v4397_v34 }
 0x143   : > { %1933 = vmatmul.mubr.bf16.gmra.mrb[4].mxu0 %v4399_v35  ;;  %2319 = vmatmul.mubr.bf16.gmra.mrb[4].mxu1 %v4399_v35 }
 0x144   : > { %1942 = vmatprep.mubr.bf16.mxu0 %v4400_v36  ;;  %2328 = vmatprep.mubr.bf16.mxu1 %v4400_v36 }
 0x14b   : > { %1943 = vmatmul.mubr.bf16.gmra.mrb[8].mxu0 %v4402_v37  ;;  %2329 = vmatmul.mubr.bf16.gmra.mrb[8].mxu1 %v4402_v37 }
 0x14c   : > { %1952 = vmatprep.mubr.bf16.mxu0 %v4403_v38  ;;  %2338 = vmatprep.mubr.bf16.mxu1 %v4403_v38 }
 0x153   : > { %1953 = vmatmul.mubr.bf16.gmra.mrb[12].mxu0 %v4405_v39  ;;  %2339 = vmatmul.mubr.bf16.gmra.mrb[12].mxu1 %v4405_v39 }
 0x154   : > { %1962 = vmatprep.mubr.bf16.mxu0 %v4406_v40  ;;  %2348 = vmatprep.mubr.bf16.mxu1 %v4406_v40 }
 0x15b   : > { %1963 = vmatmul.mubr.bf16.gmra.mrb[16].mxu0 %v4408_v41  ;;  %2349 = vmatmul.mubr.bf16.gmra.mrb[16].mxu1 %v4408_v41 }
 0x15c   : > { %1972 = vmatprep.mubr.bf16.mxu0 %v4409_v42  ;;  %2358 = vmatprep.mubr.bf16.mxu1 %v4409_v42 }
 0x163   : > { %1973 = vmatmul.mubr.bf16.gmra.mrb[20].mxu0 %v4411_v43  ;;  %2359 = vmatmul.mubr.bf16.gmra.mrb[20].mxu1 %v4411_v43 }
 0x164   : > { %1982 = vmatprep.mubr.bf16.mxu0 %v4412_v44  ;;  %2368 = vmatprep.mubr.bf16.mxu1 %v4412_v44 }
 0x16b   : > { %1983 = vmatmul.mubr.bf16.gmra.mrb[24].mxu0 %v4414_v45  ;;  %2369 = vmatmul.mubr.bf16.gmra.mrb[24].mxu1 %v4414_v45 }
 0x16c   : > { %1992 = vmatprep.mubr.bf16.mxu0 %v4415_v46  ;;  %2378 = vmatprep.mubr.bf16.mxu1 %v4415_v46 }
 0x173   : > { %1993 = vmatmul.mubr.bf16.gmra.mrb[28].mxu0 %v4417_v47  ;;  %2379 = vmatmul.mubr.bf16.gmra.mrb[28].mxu1 %v4417_v47 }
 0x174   : > { %2002 = vmatprep.mubr.bf16.mxu0 %v4418_v48  ;;  %2388 = vmatprep.mubr.bf16.mxu1 %v4418_v48 }
 0x17b   : > { %2003 = vmatmul.mubr.bf16.gmra.mrb[32].mxu0 %v4420_v49  ;;  %2389 = vmatmul.mubr.bf16.gmra.mrb[32].mxu1 %v4420_v49 }
 0x17c   : > { %2012 = vmatprep.mubr.bf16.mxu0 %v4421_v50  ;;  %2398 = vmatprep.mubr.bf16.mxu1 %v4421_v50 }
 0x183   : > { %2013 = vmatmul.mubr.bf16.gmra.mrb[36].mxu0 %v4423_v51  ;;  %2399 = vmatmul.mubr.bf16.gmra.mrb[36].mxu1 %v4423_v51 }
 0x184   : > { %2022 = vmatprep.mubr.bf16.mxu0 %v4424_v52  ;;  %2408 = vmatprep.mubr.bf16.mxu1 %v4424_v52 }
 0x18b   : > { %2023 = vmatmul.mubr.bf16.gmra.mrb[40].mxu0 %v4426_v53  ;;  %2409 = vmatmul.mubr.bf16.gmra.mrb[40].mxu1 %v4426_v53 }
 0x18c   : > { %2032 = vmatprep.mubr.bf16.mxu0 %v4427_v54  ;;  %2418 = vmatprep.mubr.bf16.mxu1 %v4427_v54 }
 0x193   : > { %2033 = vmatmul.mubr.bf16.gmra.mrb[44].mxu0 %v4429_v55  ;;  %2419 = vmatmul.mubr.bf16.gmra.mrb[44].mxu1 %v4429_v55 }
 0x194   : > { %2042 = vmatprep.mubr.bf16.mxu0 %v4430_v56  ;;  %2428 = vmatprep.mubr.bf16.mxu1 %v4430_v56 }
 0x19b   : > { %2043 = vmatmul.mubr.bf16.gmra.mrb[48].mxu0 %v4432_v57  ;;  %2429 = vmatmul.mubr.bf16.gmra.mrb[48].mxu1 %v4432_v57 }
 0x19c   : > { %2052 = vmatprep.mubr.bf16.mxu0 %v4433_v58  ;;  %2438 = vmatprep.mubr.bf16.mxu1 %v4433_v58 }
 0x1a3   : > { %2053 = vmatmul.mubr.bf16.gmra.mrb[52].mxu0 %v4435_v59  ;;  %2439 = vmatmul.mubr.bf16.gmra.mrb[52].mxu1 %v4435_v59 }
 0x1a4   : > { %2062 = vmatprep.mubr.bf16.mxu0 %v4436_v60  ;;  %2448 = vmatprep.mubr.bf16.mxu1 %v4436_v60 }
 0x1ab   : > { %2063 = vmatmul.mubr.bf16.gmra.mrb[56].mxu0 %v4438_v61  ;;  %2449 = vmatmul.mubr.bf16.gmra.mrb[56].mxu1 %v4438_v61 }
 0x1ac   : > { %2072 = vmatprep.mubr.bf16.mxu0 %v4439_v62  ;;  %2458 = vmatprep.mubr.bf16.mxu1 %v4439_v62 }
 0x1b3   : > { %2073 = vmatmul.mubr.bf16.gmra.mrb[60].mxu0 %v4441_v63  ;;  %2459 = vmatmul.mubr.bf16.gmra.mrb[60].mxu1 %v4441_v63 }
 0x20e   : > { %v1924_v11 = vpop.f32.mrb[0].mxu0  ;;  %v2310_v12 = vpop.f32.mrb[0].mxu1 }
 0x20f   : > { %v2878_v13 = vadd.f32 %v4986_v7, %v1924_v11  ;;  %v2880_v14 = vadd.f32 %v4988_v8, %v2310_v12  ;;  %v1926_v15 = vpop.f32.mrb[1].mxu0  ;;  %v2312_v16 = vpop.f32.mrb[1].mxu1 }
 0x210   : > { %v2879_v17 = vadd.f32 %v4990_v9, %v1926_v15  ;;  %v2881_v18 = vadd.f32 %v4992_v10, %v2312_v16  ;;  %v1928_v19 = vpop.f32.mrb[2].mxu0  ;;  %v2314_v20 = vpop.f32.mrb[2].mxu1 }
 0x211   : > { %v2882_v21 = vadd.f32 %v4986_v7, %v1928_v19  ;;  %v2884_v22 = vadd.f32 %v4988_v8, %v2314_v20  ;;  %v1930_v23 = vpop.f32.mrb[3].mxu0  ;;  %v2316_v24 = vpop.f32.mrb[3].mxu1 }
 0x212   : > { %v3877_v25 = vpack.c.bf16 %v2879_v17, %v2878_v13  ;;  %v3878_v26 = vpack.c.bf16 %v2881_v18, %v2880_v14  ;;  %v2883_v27 = vadd.f32 %v4990_v9, %v1930_v23  ;;  %v2885_v28 = vadd.f32 %v4992_v10, %v2316_v24 }
 0x214   : > { %3390 = vst [vmem:[%s5003_s19] sm:$0xff] %v3877_v25  ;;  %3391 = vst [vmem:[%s5003_s19 + $0x8] sm:$0xff] %v3878_v26  ;;  %v3879_v29 = vpack.c.bf16 %v2883_v27, %v2882_v21  ;;  %v3880_v30 = vpack.c.bf16 %v2885_v28, %v2884_v22 }
 0x216   : > { %3392 = vst [vmem:[%s5003_s19 + $0x10] sm:$0xff] %v3879_v29  ;;  %3393 = vst [vmem:[%s5003_s19 + $0x18] sm:$0xff] %v3880_v30  ;;  %v1934_v31 = vpop.f32.mrb[4].mxu0  ;;  %v2320_v32 = vpop.f32.mrb[4].mxu1 }
 0x217   : > { %v2886_v33 = vadd.f32 %v4986_v7, %v1934_v31  ;;  %v2888_v34 = vadd.f32 %v4988_v8, %v2320_v32  ;;  %v1936_v35 = vpop.f32.mrb[5].mxu0  ;;  %v2322_v36 = vpop.f32.mrb[5].mxu1 }
 0x218   : > { %v2887_v37 = vadd.f32 %v4990_v9, %v1936_v35  ;;  %v2889_v38 = vadd.f32 %v4992_v10, %v2322_v36  ;;  %v1938_v39 = vpop.f32.mrb[6].mxu0  ;;  %v2324_v40 = vpop.f32.mrb[6].mxu1 }
 0x219   : > { %v2890_v41 = vadd.f32 %v4986_v7, %v1938_v39  ;;  %v2892_v42 = vadd.f32 %v4988_v8, %v2324_v40  ;;  %v1940_v43 = vpop.f32.mrb[7].mxu0  ;;  %v2326_v44 = vpop.f32.mrb[7].mxu1 }
 0x21a   : > { %v3881_v45 = vpack.c.bf16 %v2887_v37, %v2886_v33  ;;  %v3882_v46 = vpack.c.bf16 %v2889_v38, %v2888_v34  ;;  %v2891_v47 = vadd.f32 %v4990_v9, %v1940_v43  ;;  %v2893_v48 = vadd.f32 %v4992_v10, %v2326_v44 }
 0x21c   : > { %3394 = vst [vmem:[%s5003_s19 + $0x20] sm:$0xff] %v3881_v45  ;;  %3395 = vst [vmem:[%s5003_s19 + $0x28] sm:$0xff] %v3882_v46  ;;  %v3883_v49 = vpack.c.bf16 %v2891_v47, %v2890_v41  ;;  %v3884_v50 = vpack.c.bf16 %v2893_v48, %v2892_v42 }
 0x21e   : > { %3396 = vst [vmem:[%s5003_s19 + $0x30] sm:$0xff] %v3883_v49  ;;  %3397 = vst [vmem:[%s5003_s19 + $0x38] sm:$0xff] %v3884_v50  ;;  %v1944_v51 = vpop.f32.mrb[8].mxu0  ;;  %v2330_v52 = vpop.f32.mrb[8].mxu1 }
 0x21f   : > { %v2894_v53 = vadd.f32 %v4986_v7, %v1944_v51  ;;  %v2896_v54 = vadd.f32 %v4988_v8, %v2330_v52  ;;  %v1946_v55 = vpop.f32.mrb[9].mxu0  ;;  %v2332_v56 = vpop.f32.mrb[9].mxu1 }
 0x220   : > { %v2895_v57 = vadd.f32 %v4990_v9, %v1946_v55  ;;  %v2897_v58 = vadd.f32 %v4992_v10, %v2332_v56  ;;  %v1948_v59 = vpop.f32.mrb[10].mxu0  ;;  %v2334_v60 = vpop.f32.mrb[10].mxu1 }
 0x221   : > { %v2898_v61 = vadd.f32 %v4986_v7, %v1948_v59  ;;  %v2900_v62 = vadd.f32 %v4988_v8, %v2334_v60  ;;  %v1950_v63 = vpop.f32.mrb[11].mxu0  ;;  %v2336_v0 = vpop.f32.mrb[11].mxu1 }
 0x222   : > { %v3885_v1 = vpack.c.bf16 %v2895_v57, %v2894_v53  ;;  %v3886_v2 = vpack.c.bf16 %v2897_v58, %v2896_v54  ;;  %v2899_v3 = vadd.f32 %v4990_v9, %v1950_v63  ;;  %v2901_v4 = vadd.f32 %v4992_v10, %v2336_v0 }
 0x224   : > { %3398 = vst [vmem:[%s5003_s19 + $0x40] sm:$0xff] %v3885_v1  ;;  %3399 = vst [vmem:[%s5003_s19 + $0x48] sm:$0xff] %v3886_v2  ;;  %v3887_v5 = vpack.c.bf16 %v2899_v3, %v2898_v61  ;;  %v3888_v6 = vpack.c.bf16 %v2901_v4, %v2900_v62 }
 0x226   : > { %3400 = vst [vmem:[%s5003_s19 + $0x50] sm:$0xff] %v3887_v5  ;;  %3401 = vst [vmem:[%s5003_s19 + $0x58] sm:$0xff] %v3888_v6  ;;  %v1954_v11 = vpop.f32.mrb[12].mxu0  ;;  %v2340_v12 = vpop.f32.mrb[12].mxu1 }
 0x227   : > { %v2902_v13 = vadd.f32 %v4986_v7, %v1954_v11  ;;  %v2904_v14 = vadd.f32 %v4988_v8, %v2340_v12  ;;  %v1956_v15 = vpop.f32.mrb[13].mxu0  ;;  %v2342_v16 = vpop.f32.mrb[13].mxu1 }
 0x228   : > { %v2903_v17 = vadd.f32 %v4990_v9, %v1956_v15  ;;  %v2905_v18 = vadd.f32 %v4992_v10, %v2342_v16  ;;  %v1958_v19 = vpop.f32.mrb[14].mxu0  ;;  %v2344_v20 = vpop.f32.mrb[14].mxu1 }
 0x229   : > { %v2906_v21 = vadd.f32 %v4986_v7, %v1958_v19  ;;  %v2908_v22 = vadd.f32 %v4988_v8, %v2344_v20  ;;  %v1960_v23 = vpop.f32.mrb[15].mxu0  ;;  %v2346_v24 = vpop.f32.mrb[15].mxu1 }
 0x22a   : > { %v3889_v25 = vpack.c.bf16 %v2903_v17, %v2902_v13  ;;  %v3890_v26 = vpack.c.bf16 %v2905_v18, %v2904_v14  ;;  %v2907_v27 = vadd.f32 %v4990_v9, %v1960_v23  ;;  %v2909_v28 = vadd.f32 %v4992_v10, %v2346_v24 }
 0x22c   : > { %3402 = vst [vmem:[%s5003_s19 + $0x60] sm:$0xff] %v3889_v25  ;;  %3403 = vst [vmem:[%s5003_s19 + $0x68] sm:$0xff] %v3890_v26  ;;  %v3891_v29 = vpack.c.bf16 %v2907_v27, %v2906_v21  ;;  %v3892_v30 = vpack.c.bf16 %v2909_v28, %v2908_v22 }
 0x22e   : > { %3404 = vst [vmem:[%s5003_s19 + $0x70] sm:$0xff] %v3891_v29  ;;  %3405 = vst [vmem:[%s5003_s19 + $0x78] sm:$0xff] %v3892_v30  ;;  %v1964_v31 = vpop.f32.mrb[16].mxu0  ;;  %v2350_v32 = vpop.f32.mrb[16].mxu1 }
 0x22f   : > { %v2910_v33 = vadd.f32 %v4986_v7, %v1964_v31  ;;  %v2912_v34 = vadd.f32 %v4988_v8, %v2350_v32  ;;  %v1966_v35 = vpop.f32.mrb[17].mxu0  ;;  %v2352_v36 = vpop.f32.mrb[17].mxu1 }
 0x230   : > { %v2911_v37 = vadd.f32 %v4990_v9, %v1966_v35  ;;  %v2913_v38 = vadd.f32 %v4992_v10, %v2352_v36  ;;  %v1968_v39 = vpop.f32.mrb[18].mxu0  ;;  %v2354_v40 = vpop.f32.mrb[18].mxu1 }
 0x231   : > { %v2914_v41 = vadd.f32 %v4986_v7, %v1968_v39  ;;  %v2916_v42 = vadd.f32 %v4988_v8, %v2354_v40  ;;  %v1970_v43 = vpop.f32.mrb[19].mxu0  ;;  %v2356_v44 = vpop.f32.mrb[19].mxu1 }
 0x232   : > { %v3893_v45 = vpack.c.bf16 %v2911_v37, %v2910_v33  ;;  %v3894_v46 = vpack.c.bf16 %v2913_v38, %v2912_v34  ;;  %v2915_v47 = vadd.f32 %v4990_v9, %v1970_v43  ;;  %v2917_v48 = vadd.f32 %v4992_v10, %v2356_v44 }
 0x234   : > { %3406 = vst [vmem:[%s5003_s19 + $0x80] sm:$0xff] %v3893_v45  ;;  %3407 = vst [vmem:[%s5003_s19 + $0x88] sm:$0xff] %v3894_v46  ;;  %v3895_v49 = vpack.c.bf16 %v2915_v47, %v2914_v41  ;;  %v3896_v50 = vpack.c.bf16 %v2917_v48, %v2916_v42 }
 0x236   : > { %3408 = vst [vmem:[%s5003_s19 + $0x90] sm:$0xff] %v3895_v49  ;;  %3409 = vst [vmem:[%s5003_s19 + $0x98] sm:$0xff] %v3896_v50  ;;  %v1974_v51 = vpop.f32.mrb[20].mxu0  ;;  %v2360_v52 = vpop.f32.mrb[20].mxu1 }
 0x237   : > { %v2918_v53 = vadd.f32 %v4986_v7, %v1974_v51  ;;  %v2920_v54 = vadd.f32 %v4988_v8, %v2360_v52  ;;  %v1976_v55 = vpop.f32.mrb[21].mxu0  ;;  %v2362_v56 = vpop.f32.mrb[21].mxu1 }
 0x238   : > { %v2919_v57 = vadd.f32 %v4990_v9, %v1976_v55  ;;  %v2921_v58 = vadd.f32 %v4992_v10, %v2362_v56  ;;  %v1978_v59 = vpop.f32.mrb[22].mxu0  ;;  %v2364_v60 = vpop.f32.mrb[22].mxu1 }
 0x239   : > { %v2922_v61 = vadd.f32 %v4986_v7, %v1978_v59  ;;  %v2924_v62 = vadd.f32 %v4988_v8, %v2364_v60  ;;  %v1980_v63 = vpop.f32.mrb[23].mxu0  ;;  %v2366_v0 = vpop.f32.mrb[23].mxu1 }
 0x23a   : > { %v3897_v1 = vpack.c.bf16 %v2919_v57, %v2918_v53  ;;  %v3898_v2 = vpack.c.bf16 %v2921_v58, %v2920_v54  ;;  %v2923_v3 = vadd.f32 %v4990_v9, %v1980_v63  ;;  %v2925_v4 = vadd.f32 %v4992_v10, %v2366_v0 }
 0x23c   : > { %3410 = vst [vmem:[%s5003_s19 + $0xa0] sm:$0xff] %v3897_v1  ;;  %3411 = vst [vmem:[%s5003_s19 + $0xa8] sm:$0xff] %v3898_v2  ;;  %v3899_v5 = vpack.c.bf16 %v2923_v3, %v2922_v61  ;;  %v3900_v6 = vpack.c.bf16 %v2925_v4, %v2924_v62 }
 0x23e   : > { %3412 = vst [vmem:[%s5003_s19 + $0xb0] sm:$0xff] %v3899_v5  ;;  %3413 = vst [vmem:[%s5003_s19 + $0xb8] sm:$0xff] %v3900_v6  ;;  %v1984_v11 = vpop.f32.mrb[24].mxu0  ;;  %v2370_v12 = vpop.f32.mrb[24].mxu1 }
 0x23f   : > { %v2926_v13 = vadd.f32 %v4986_v7, %v1984_v11  ;;  %v2928_v14 = vadd.f32 %v4988_v8, %v2370_v12  ;;  %v1986_v15 = vpop.f32.mrb[25].mxu0  ;;  %v2372_v16 = vpop.f32.mrb[25].mxu1 }
 0x240   : > { %v2927_v17 = vadd.f32 %v4990_v9, %v1986_v15  ;;  %v2929_v18 = vadd.f32 %v4992_v10, %v2372_v16  ;;  %v1988_v19 = vpop.f32.mrb[26].mxu0  ;;  %v2374_v20 = vpop.f32.mrb[26].mxu1 }
 0x241   : > { %v2930_v21 = vadd.f32 %v4986_v7, %v1988_v19  ;;  %v2932_v22 = vadd.f32 %v4988_v8, %v2374_v20  ;;  %v1990_v23 = vpop.f32.mrb[27].mxu0  ;;  %v2376_v24 = vpop.f32.mrb[27].mxu1 }
 0x242   : > { %v3901_v25 = vpack.c.bf16 %v2927_v17, %v2926_v13  ;;  %v3902_v26 = vpack.c.bf16 %v2929_v18, %v2928_v14  ;;  %v2931_v27 = vadd.f32 %v4990_v9, %v1990_v23  ;;  %v2933_v28 = vadd.f32 %v4992_v10, %v2376_v24 }
 0x244   : > { %3414 = vst [vmem:[%s5003_s19 + $0xc0] sm:$0xff] %v3901_v25  ;;  %3415 = vst [vmem:[%s5003_s19 + $0xc8] sm:$0xff] %v3902_v26  ;;  %v3903_v29 = vpack.c.bf16 %v2931_v27, %v2930_v21  ;;  %v3904_v30 = vpack.c.bf16 %v2933_v28, %v2932_v22 }
 0x246   : > { %3416 = vst [vmem:[%s5003_s19 + $0xd0] sm:$0xff] %v3903_v29  ;;  %3417 = vst [vmem:[%s5003_s19 + $0xd8] sm:$0xff] %v3904_v30  ;;  %v1994_v31 = vpop.f32.mrb[28].mxu0  ;;  %v2380_v32 = vpop.f32.mrb[28].mxu1 }
 0x247   : > { %v2934_v33 = vadd.f32 %v4986_v7, %v1994_v31  ;;  %v2936_v34 = vadd.f32 %v4988_v8, %v2380_v32  ;;  %v1996_v35 = vpop.f32.mrb[29].mxu0  ;;  %v2382_v36 = vpop.f32.mrb[29].mxu1 }
 0x248   : > { %v2935_v37 = vadd.f32 %v4990_v9, %v1996_v35  ;;  %v2937_v38 = vadd.f32 %v4992_v10, %v2382_v36  ;;  %v1998_v39 = vpop.f32.mrb[30].mxu0  ;;  %v2384_v40 = vpop.f32.mrb[30].mxu1 }
 0x249   : > { %v2938_v41 = vadd.f32 %v4986_v7, %v1998_v39  ;;  %v2940_v42 = vadd.f32 %v4988_v8, %v2384_v40  ;;  %v2000_v43 = vpop.f32.mrb[31].mxu0  ;;  %v2386_v44 = vpop.f32.mrb[31].mxu1 }
 0x24a   : > { %v3905_v45 = vpack.c.bf16 %v2935_v37, %v2934_v33  ;;  %v3906_v46 = vpack.c.bf16 %v2937_v38, %v2936_v34  ;;  %v2939_v47 = vadd.f32 %v4990_v9, %v2000_v43  ;;  %v2941_v48 = vadd.f32 %v4992_v10, %v2386_v44 }
 0x24c   : > { %3418 = vst [vmem:[%s5003_s19 + $0xe0] sm:$0xff] %v3905_v45  ;;  %3419 = vst [vmem:[%s5003_s19 + $0xe8] sm:$0xff] %v3906_v46  ;;  %v3907_v49 = vpack.c.bf16 %v2939_v47, %v2938_v41  ;;  %v3908_v50 = vpack.c.bf16 %v2941_v48, %v2940_v42 }
 0x24e   : > { %3420 = vst [vmem:[%s5003_s19 + $0xf0] sm:$0xff] %v3907_v49  ;;  %3421 = vst [vmem:[%s5003_s19 + $0xf8] sm:$0xff] %v3908_v50  ;;  %v2004_v51 = vpop.f32.mrb[32].mxu0  ;;  %v2390_v52 = vpop.f32.mrb[32].mxu1 }
 0x24f   : > { %v2942_v53 = vadd.f32 %v4986_v7, %v2004_v51  ;;  %v2944_v54 = vadd.f32 %v4988_v8, %v2390_v52  ;;  %v2006_v55 = vpop.f32.mrb[33].mxu0  ;;  %v2392_v56 = vpop.f32.mrb[33].mxu1 }
 0x250   : > { %v2943_v57 = vadd.f32 %v4990_v9, %v2006_v55  ;;  %v2945_v58 = vadd.f32 %v4992_v10, %v2392_v56  ;;  %v2008_v59 = vpop.f32.mrb[34].mxu0  ;;  %v2394_v60 = vpop.f32.mrb[34].mxu1 }
 0x251   : > { %v2946_v61 = vadd.f32 %v4986_v7, %v2008_v59  ;;  %v2948_v62 = vadd.f32 %v4988_v8, %v2394_v60  ;;  %v2010_v63 = vpop.f32.mrb[35].mxu0  ;;  %v2396_v0 = vpop.f32.mrb[35].mxu1 }
 0x252   : > { %v3909_v1 = vpack.c.bf16 %v2943_v57, %v2942_v53  ;;  %v3910_v2 = vpack.c.bf16 %v2945_v58, %v2944_v54  ;;  %v2947_v3 = vadd.f32 %v4990_v9, %v2010_v63  ;;  %v2949_v4 = vadd.f32 %v4992_v10, %v2396_v0 }
 0x254   : > { %3422 = vst [vmem:[%s5003_s19 + $0x100] sm:$0xff] %v3909_v1  ;;  %3423 = vst [vmem:[%s5003_s19 + $0x108] sm:$0xff] %v3910_v2  ;;  %v3911_v5 = vpack.c.bf16 %v2947_v3, %v2946_v61  ;;  %v3912_v6 = vpack.c.bf16 %v2949_v4, %v2948_v62 }
 0x256   : > { %3424 = vst [vmem:[%s5003_s19 + $0x110] sm:$0xff] %v3911_v5  ;;  %3425 = vst [vmem:[%s5003_s19 + $0x118] sm:$0xff] %v3912_v6  ;;  %v2014_v11 = vpop.f32.mrb[36].mxu0  ;;  %v2400_v12 = vpop.f32.mrb[36].mxu1 }
 0x257   : > { %v2950_v13 = vadd.f32 %v4986_v7, %v2014_v11  ;;  %v2952_v14 = vadd.f32 %v4988_v8, %v2400_v12  ;;  %v2016_v15 = vpop.f32.mrb[37].mxu0  ;;  %v2402_v16 = vpop.f32.mrb[37].mxu1 }
 0x258   : > { %v2951_v17 = vadd.f32 %v4990_v9, %v2016_v15  ;;  %v2953_v18 = vadd.f32 %v4992_v10, %v2402_v16  ;;  %v2018_v19 = vpop.f32.mrb[38].mxu0  ;;  %v2404_v20 = vpop.f32.mrb[38].mxu1 }
 0x259   : > { %v2954_v21 = vadd.f32 %v4986_v7, %v2018_v19  ;;  %v2956_v22 = vadd.f32 %v4988_v8, %v2404_v20  ;;  %v2020_v23 = vpop.f32.mrb[39].mxu0  ;;  %v2406_v24 = vpop.f32.mrb[39].mxu1 }
 0x25a   : > { %v3913_v25 = vpack.c.bf16 %v2951_v17, %v2950_v13  ;;  %v3914_v26 = vpack.c.bf16 %v2953_v18, %v2952_v14  ;;  %v2955_v27 = vadd.f32 %v4990_v9, %v2020_v23  ;;  %v2957_v28 = vadd.f32 %v4992_v10, %v2406_v24 }
 0x25c   : > { %3426 = vst [vmem:[%s5003_s19 + $0x120] sm:$0xff] %v3913_v25  ;;  %3427 = vst [vmem:[%s5003_s19 + $0x128] sm:$0xff] %v3914_v26  ;;  %v3915_v29 = vpack.c.bf16 %v2955_v27, %v2954_v21  ;;  %v3916_v30 = vpack.c.bf16 %v2957_v28, %v2956_v22 }
 0x25e   : > { %3428 = vst [vmem:[%s5003_s19 + $0x130] sm:$0xff] %v3915_v29  ;;  %3429 = vst [vmem:[%s5003_s19 + $0x138] sm:$0xff] %v3916_v30  ;;  %v2024_v31 = vpop.f32.mrb[40].mxu0  ;;  %v2410_v32 = vpop.f32.mrb[40].mxu1 }
 0x25f   : > { %v2958_v33 = vadd.f32 %v4986_v7, %v2024_v31  ;;  %v2960_v34 = vadd.f32 %v4988_v8, %v2410_v32  ;;  %v2026_v35 = vpop.f32.mrb[41].mxu0  ;;  %v2412_v36 = vpop.f32.mrb[41].mxu1 }
 0x260   : > { %v2959_v37 = vadd.f32 %v4990_v9, %v2026_v35  ;;  %v2961_v38 = vadd.f32 %v4992_v10, %v2412_v36  ;;  %v2028_v39 = vpop.f32.mrb[42].mxu0  ;;  %v2414_v40 = vpop.f32.mrb[42].mxu1 }
 0x261   : > { %v2962_v41 = vadd.f32 %v4986_v7, %v2028_v39  ;;  %v2964_v42 = vadd.f32 %v4988_v8, %v2414_v40  ;;  %v2030_v43 = vpop.f32.mrb[43].mxu0  ;;  %v2416_v44 = vpop.f32.mrb[43].mxu1 }
 0x262   : > { %v3917_v45 = vpack.c.bf16 %v2959_v37, %v2958_v33  ;;  %v3918_v46 = vpack.c.bf16 %v2961_v38, %v2960_v34  ;;  %v2963_v47 = vadd.f32 %v4990_v9, %v2030_v43  ;;  %v2965_v48 = vadd.f32 %v4992_v10, %v2416_v44 }
 0x264   : > { %3430 = vst [vmem:[%s5003_s19 + $0x140] sm:$0xff] %v3917_v45  ;;  %3431 = vst [vmem:[%s5003_s19 + $0x148] sm:$0xff] %v3918_v46  ;;  %v3919_v49 = vpack.c.bf16 %v2963_v47, %v2962_v41  ;;  %v3920_v50 = vpack.c.bf16 %v2965_v48, %v2964_v42 }
 0x266   : > { %3432 = vst [vmem:[%s5003_s19 + $0x150] sm:$0xff] %v3919_v49  ;;  %3433 = vst [vmem:[%s5003_s19 + $0x158] sm:$0xff] %v3920_v50  ;;  %v2034_v51 = vpop.f32.mrb[44].mxu0  ;;  %v2420_v52 = vpop.f32.mrb[44].mxu1 }
 0x267   : > { %v2966_v53 = vadd.f32 %v4986_v7, %v2034_v51  ;;  %v2968_v54 = vadd.f32 %v4988_v8, %v2420_v52  ;;  %v2036_v55 = vpop.f32.mrb[45].mxu0  ;;  %v2422_v56 = vpop.f32.mrb[45].mxu1 }
 0x268   : > { %v2967_v57 = vadd.f32 %v4990_v9, %v2036_v55  ;;  %v2969_v58 = vadd.f32 %v4992_v10, %v2422_v56  ;;  %v2038_v59 = vpop.f32.mrb[46].mxu0  ;;  %v2424_v60 = vpop.f32.mrb[46].mxu1 }
 0x269   : > { %v2970_v61 = vadd.f32 %v4986_v7, %v2038_v59  ;;  %v2972_v62 = vadd.f32 %v4988_v8, %v2424_v60  ;;  %v2040_v63 = vpop.f32.mrb[47].mxu0  ;;  %v2426_v0 = vpop.f32.mrb[47].mxu1 }
 0x26a   : > { %v3921_v1 = vpack.c.bf16 %v2967_v57, %v2966_v53  ;;  %v3922_v2 = vpack.c.bf16 %v2969_v58, %v2968_v54  ;;  %v2971_v3 = vadd.f32 %v4990_v9, %v2040_v63  ;;  %v2973_v4 = vadd.f32 %v4992_v10, %v2426_v0 }
 0x26c   : > { %3434 = vst [vmem:[%s5003_s19 + $0x160] sm:$0xff] %v3921_v1  ;;  %3435 = vst [vmem:[%s5003_s19 + $0x168] sm:$0xff] %v3922_v2  ;;  %v3923_v5 = vpack.c.bf16 %v2971_v3, %v2970_v61  ;;  %v3924_v6 = vpack.c.bf16 %v2973_v4, %v2972_v62 }
 0x26e   : > { %3436 = vst [vmem:[%s5003_s19 + $0x170] sm:$0xff] %v3923_v5  ;;  %3437 = vst [vmem:[%s5003_s19 + $0x178] sm:$0xff] %v3924_v6  ;;  %v2044_v11 = vpop.f32.mrb[48].mxu0  ;;  %v2430_v12 = vpop.f32.mrb[48].mxu1 }
 0x26f   : > { %v2974_v13 = vadd.f32 %v4986_v7, %v2044_v11  ;;  %v2976_v14 = vadd.f32 %v4988_v8, %v2430_v12  ;;  %v2046_v15 = vpop.f32.mrb[49].mxu0  ;;  %v2432_v16 = vpop.f32.mrb[49].mxu1 }
 0x270   : > { %v2975_v17 = vadd.f32 %v4990_v9, %v2046_v15  ;;  %v2977_v18 = vadd.f32 %v4992_v10, %v2432_v16  ;;  %v2048_v19 = vpop.f32.mrb[50].mxu0  ;;  %v2434_v20 = vpop.f32.mrb[50].mxu1 }
 0x271   : > { %v2978_v21 = vadd.f32 %v4986_v7, %v2048_v19  ;;  %v2980_v22 = vadd.f32 %v4988_v8, %v2434_v20  ;;  %v2050_v23 = vpop.f32.mrb[51].mxu0  ;;  %v2436_v24 = vpop.f32.mrb[51].mxu1 }
 0x272   : > { %v3925_v25 = vpack.c.bf16 %v2975_v17, %v2974_v13  ;;  %v3926_v26 = vpack.c.bf16 %v2977_v18, %v2976_v14  ;;  %v2979_v27 = vadd.f32 %v4990_v9, %v2050_v23  ;;  %v2981_v28 = vadd.f32 %v4992_v10, %v2436_v24 }
 0x274   : > { %3438 = vst [vmem:[%s5003_s19 + $0x180] sm:$0xff] %v3925_v25  ;;  %3439 = vst [vmem:[%s5003_s19 + $0x188] sm:$0xff] %v3926_v26  ;;  %v3927_v29 = vpack.c.bf16 %v2979_v27, %v2978_v21  ;;  %v3928_v30 = vpack.c.bf16 %v2981_v28, %v2980_v22 }
 0x276   : > { %3440 = vst [vmem:[%s5003_s19 + $0x190] sm:$0xff] %v3927_v29  ;;  %3441 = vst [vmem:[%s5003_s19 + $0x198] sm:$0xff] %v3928_v30  ;;  %v2054_v31 = vpop.f32.mrb[52].mxu0  ;;  %v2440_v32 = vpop.f32.mrb[52].mxu1 }
 0x277   : > { %v2982_v33 = vadd.f32 %v4986_v7, %v2054_v31  ;;  %v2984_v34 = vadd.f32 %v4988_v8, %v2440_v32  ;;  %v2056_v35 = vpop.f32.mrb[53].mxu0  ;;  %v2442_v36 = vpop.f32.mrb[53].mxu1 }
 0x278   : > { %v2983_v37 = vadd.f32 %v4990_v9, %v2056_v35  ;;  %v2985_v38 = vadd.f32 %v4992_v10, %v2442_v36  ;;  %v2058_v39 = vpop.f32.mrb[54].mxu0  ;;  %v2444_v40 = vpop.f32.mrb[54].mxu1 }
 0x279   : > { %v2986_v41 = vadd.f32 %v4986_v7, %v2058_v39  ;;  %v2988_v42 = vadd.f32 %v4988_v8, %v2444_v40  ;;  %v2060_v43 = vpop.f32.mrb[55].mxu0  ;;  %v2446_v44 = vpop.f32.mrb[55].mxu1 }
 0x27a   : > { %v3929_v45 = vpack.c.bf16 %v2983_v37, %v2982_v33  ;;  %v3930_v46 = vpack.c.bf16 %v2985_v38, %v2984_v34  ;;  %v2987_v47 = vadd.f32 %v4990_v9, %v2060_v43  ;;  %v2989_v48 = vadd.f32 %v4992_v10, %v2446_v44 }
 0x27c   : > { %3442 = vst [vmem:[%s5003_s19 + $0x1a0] sm:$0xff] %v3929_v45  ;;  %3443 = vst [vmem:[%s5003_s19 + $0x1a8] sm:$0xff] %v3930_v46  ;;  %v3931_v49 = vpack.c.bf16 %v2987_v47, %v2986_v41  ;;  %v3932_v50 = vpack.c.bf16 %v2989_v48, %v2988_v42 }
 0x27e   : > { %3444 = vst [vmem:[%s5003_s19 + $0x1b0] sm:$0xff] %v3931_v49  ;;  %3445 = vst [vmem:[%s5003_s19 + $0x1b8] sm:$0xff] %v3932_v50  ;;  %v2064_v51 = vpop.f32.mrb[56].mxu0  ;;  %v2450_v52 = vpop.f32.mrb[56].mxu1 }
 0x27f   : > { %v2990_v53 = vadd.f32 %v4986_v7, %v2064_v51  ;;  %v2992_v54 = vadd.f32 %v4988_v8, %v2450_v52  ;;  %v2066_v55 = vpop.f32.mrb[57].mxu0  ;;  %v2452_v56 = vpop.f32.mrb[57].mxu1 }
 0x280   : > { %v2991_v57 = vadd.f32 %v4990_v9, %v2066_v55  ;;  %v2993_v58 = vadd.f32 %v4992_v10, %v2452_v56  ;;  %v2068_v59 = vpop.f32.mrb[58].mxu0  ;;  %v2454_v60 = vpop.f32.mrb[58].mxu1 }
 0x281   : > { %v2994_v61 = vadd.f32 %v4986_v7, %v2068_v59  ;;  %v2996_v62 = vadd.f32 %v4988_v8, %v2454_v60  ;;  %v2070_v63 = vpop.f32.mrb[59].mxu0  ;;  %v2456_v0 = vpop.f32.mrb[59].mxu1 }
 0x282   : > { %v3933_v1 = vpack.c.bf16 %v2991_v57, %v2990_v53  ;;  %v3934_v2 = vpack.c.bf16 %v2993_v58, %v2992_v54  ;;  %v2995_v3 = vadd.f32 %v4990_v9, %v2070_v63  ;;  %v2997_v4 = vadd.f32 %v4992_v10, %v2456_v0 }
 0x284   : > { %3446 = vst [vmem:[%s5003_s19 + $0x1c0] sm:$0xff] %v3933_v1  ;;  %3447 = vst [vmem:[%s5003_s19 + $0x1c8] sm:$0xff] %v3934_v2  ;;  %v3935_v5 = vpack.c.bf16 %v2995_v3, %v2994_v61  ;;  %v3936_v6 = vpack.c.bf16 %v2997_v4, %v2996_v62 }
 0x286   : > { %3448 = vst [vmem:[%s5003_s19 + $0x1d0] sm:$0xff] %v3935_v5  ;;  %3449 = vst [vmem:[%s5003_s19 + $0x1d8] sm:$0xff] %v3936_v6  ;;  %v2074_v11 = vpop.f32.mrb[60].mxu0  ;;  %v2460_v12 = vpop.f32.mrb[60].mxu1 }
 0x287   : > { %v2998_v13 = vadd.f32 %v4986_v7, %v2074_v11  ;;  %v3000_v14 = vadd.f32 %v4988_v8, %v2460_v12  ;;  %v2076_v15 = vpop.f32.mrb[61].mxu0  ;;  %v2462_v16 = vpop.f32.mrb[61].mxu1 }
 0x288   : > { %v2999_v17 = vadd.f32 %v4990_v9, %v2076_v15  ;;  %v3001_v18 = vadd.f32 %v4992_v10, %v2462_v16  ;;  %v2078_v19 = vpop.f32.mrb[62].mxu0  ;;  %v2464_v20 = vpop.f32.mrb[62].mxu1 }
 0x289   : > { %v3002_v21 = vadd.f32 %v4986_v7, %v2078_v19  ;;  %v3004_v22 = vadd.f32 %v4988_v8, %v2464_v20  ;;  %v2080_v23 = vpop.f32.mrb[63].mxu0  ;;  %v2466_v24 = vpop.f32.mrb[63].mxu1 }
 0x28a   : > { %v3937_v25 = vpack.c.bf16 %v2999_v17, %v2998_v13  ;;  %v3938_v26 = vpack.c.bf16 %v3001_v18, %v3000_v14  ;;  %v3003_v27 = vadd.f32 %v4990_v9, %v2080_v23  ;;  %v3005_v28 = vadd.f32 %v4992_v10, %v2466_v24 }
 0x28c   : > { %3450 = vst [vmem:[%s5003_s19 + $0x1e0] sm:$0xff] %v3937_v25  ;;  %3451 = vst [vmem:[%s5003_s19 + $0x1e8] sm:$0xff] %v3938_v26  ;;  %v3939_v7 = vpack.c.bf16 %v3003_v27, %v3002_v21  ;;  %v3940_v8 = vpack.c.bf16 %v3005_v28, %v3004_v22 }
 0x28e   : > { %3452 = vst [vmem:[%s5003_s19 + $0x1f0] sm:$0xff] %v3939_v7  ;;  %3453 = vst [vmem:[%s5003_s19 + $0x1f8] sm:$0xff] %v3940_v8 }
 0x28f   : > { %4543 = shalt.err (!%p4540_p2)
}
 0x290   : > { %s4544_s7 = scalar_lea.hbm %s5190_s23, 8192  ;;  %s4548_s28 = scalar_lea.hbm %s5248_s3, 16384 }
 0x291   : > { %p4545_p6 = scmp.ne.s32.totalorder %s5190_s23, %s4544_s7  ;;  %p4549_p5 = scmp.lt.u32.totalorder %s5190_s23, %s5248_s3 }
 0x292   : > { %p4550_p8 = scmp.lt.u32.totalorder %s4548_s28, %s4544_s7  ;;  %p4552_p10 = scmp.lt.u32.totalorder %s4544_s7, %s5190_s23 }
 0x293   : > { %p4546_p12 = pnand %p4545_p6, %p5272_p13 }
 0x294   : > { %p4551_p11 = por %p4550_p8, %p4549_p5 }
 0x295   : > { %p4547_p9 = pneg %p4546_p12 }
 0x296   : > { %p4553_p0 = por %p4552_p10, %p4551_p11 }
 0x298   : > { %p4554_p7 = pnand %p4553_p0, %p4547_p9 }
 0x29a   : > { %4557 = shalt.err (!%p4554_p7)
}
 0x29b   : > { %s4625_s10 = smov 256   ;;  %s4626_s19 = smov 512  }
 0x29c   : > { %s4627_s11 = smov 16  }
 0x29d   : > { %4078 = dma.vmem_to_hbm [thread:$0]  (%p5272_p13), %s5192_s22, 8192, %s5190_s23, %s3455_s5, %s4625_s10, %s4626_s19, %s4627_s11  }
 0x29e PF: > { %s3486_s15 = sand.u32 1, %s4596_s12   ;;  %p5273_p3 = scmp.ne.s32.totalorder %s5262_s4, 0 }
 0x29f   : > { %p5274_p1 = scmp.ge.s32.totalorder %s4616_s17, 2  ;;  %s3487_s9 = scalar_lea.sflag [#allocation5], %s3486_s15 }
 0x2a1   : > { %p4092_p4 = pnand %p5274_p1, %p5273_p3 }
 0x2a3   : > { %4591 = dma.done.wait (!%p4092_p4), %s3487_s9, 8192  }
 0x2a4   : > { %4593 = vsyncadd (!%p4092_p4), %s3487_s9, 4294959104  ;;  %s20_s17 = sadd.s32 1, %s4616_s17   ;;  %s5275_s12 = smov %s4600_s13 }
 0x2a5   : > { %p17_p2 = scmp.ge.s32.totalorder %s20_s17, 4   ;;  %s5276_s13 = smov %s4604_s14 }
 0x2a6   : > { %s5277_s14 = smov %s4699_s24  ;;  %s5278_s15 = smov %s4612_s16 }
 0x2a7   : > { %s5279_s16 = smov %s5281_s18  ;;  %19 = sbr.rel (!%p17_p2) target bundleno = 9 (0x9), region = 102 }
 0x2ae   :  { %3492 = vsyncpa [#allocation4], 1 }
 0x2af   :  { %3494 = vsyncpa [#allocation4 + $0x1], 1 }
 0x2b0   :  { %3495 = vsyncpa [#allocation7], 1 }
 0x2b1   :  { %3497 = vsyncpa [#allocation7 + $0x1], 1 }
 0x2b2   :  { %3498 = vsyncpa [#allocation5], 1 }
 0x2b3   :  { %3500 = vsyncpa [#allocation5 + $0x1], 1 }

</bundles_post_ra>
